<compile_context>
chip_gen: v7x
topology: tpu7x:2x2x1
jax: 0.10.0
libtpu: 0.0.40
codegen_flags: <defaults>
</compile_context>

<pallas_src>
import jax
import jax.numpy as jnp
from jax.experimental import pallas as pl
from jax.experimental.pallas import tpu as pltpu

IN_FEATURES = 28 * 28
HIDDEN = 512
NUM_CLASSES = 10


def _round_up(x, m):
    return (x + m - 1) // m * m


def _cdiv(a, b):
    return -(-a // b)


# --------------------------------------------------------------------------
# Kernel: whole MLP chain for one batch tile.  bf16 MXU inputs, f32 accum.
# --------------------------------------------------------------------------
def ae_mlp_kernel(x_ref,                     # (TB, 896)   f32 (cast in-kernel)
                  w1_ref,                    # (896, Rp)   bf16 (no bias)
                  w2_ref, b2_ref,            # (Rp, 512) bf16, (1, 512) f32
                  w3_ref,                    # (512, Rp)   bf16 (no bias)
                  w4_ref, b4_ref,            # (Rp, 512) bf16, (1, 512) f32
                  w56_ref, b6_ref,           # (512, 128) bf16 (=W5@W6), (1,128) f32
                  o_ref):                    # (TB, 128)   bf16 (lane-dense)
    x = x_ref[...].astype(jnp.bfloat16)                               # in-kernel cast
    h = jnp.dot(x, w1_ref[...], preferred_element_type=jnp.float32)
    h = jnp.dot(h.astype(jnp.bfloat16), w2_ref[...],
                preferred_element_type=jnp.float32) + b2_ref[...]
    h = jnp.maximum(h, 0.0)                                           # ReLU (f32 VPU)
    h = jnp.dot(h.astype(jnp.bfloat16), w3_ref[...],
                preferred_element_type=jnp.float32)
    h = jnp.dot(h.astype(jnp.bfloat16), w4_ref[...],
                preferred_element_type=jnp.float32) + b4_ref[...]
    h = jnp.maximum(h, 0.0)                                           # ReLU (f32 VPU)
    logits = jnp.dot(h.astype(jnp.bfloat16), w56_ref[...],            # fused W5@W6
                     preferred_element_type=jnp.float32) + b6_ref[...]
    o_ref[...] = logits.astype(o_ref.dtype)


# --------------------------------------------------------------------------
# Wrapper
# --------------------------------------------------------------------------
def ae_forward(x_nchw, kernel_params, *, tb=512):
    """x_nchw: (B, 1, 28, 28). kernel_params: output of prepare_params().
    tb: target rows per batch tile (primary tuning knob; multiple of 16)."""
    w1, w2, b2, w3, w4, b4, w56, b6 = kernel_params
    weights = (w1, w2, b2, w3, w4, b4, w56, b6)
    in_pad = w1.shape[0]          # 896
    r_pad = w1.shape[1]           # 128
    out_pad = w56.shape[1]        # 128

    B = x_nchw.shape[0]
    x_flat = x_nchw.reshape(B, -1).astype(jnp.float32)   # nn.Flatten (row-major)
    if x_flat.shape[1] != in_pad:                        # lane-dense K (784 -> 896)
        x_flat = jnp.pad(x_flat, ((0, 0), (0, in_pad - x_flat.shape[1])))

    # Adaptive batch tiling:
    #  - TB is always a multiple of 16 (bf16 sublane packing of the output).
    #  - For B > 16 force >= 2 tiles (v7x has 2 TensorCores) and split evenly
    #    so row padding costs at most one 16-row group (never a whole tile).
    if B <= 16:
        TB = 16
    else:
        n_tiles = max(2, _cdiv(B, tb))
        TB = _round_up(_cdiv(B, n_tiles), 16)
    padded_B = _round_up(B, TB)
    if padded_B != B:
        x_flat = jnp.pad(x_flat, ((0, padded_B - B), (0, 0)))
    n_tiles = padded_B // TB

    flops = 2 * padded_B * (in_pad * r_pad + r_pad * HIDDEN + HIDDEN * r_pad
                            + r_pad * HIDDEN + HIDDEN * out_pad)
    bytes_accessed = (int(x_flat.size) * 4
                      + sum(int(a.size) * a.dtype.itemsize for a in weights)
                      + padded_B * out_pad * 2)

    def build_and_call(buffer_weights):
        def resident_spec(a):
            nd = a.ndim
            idx = lambda i: (0,) * nd                    # constant block -> VMEM resident
            if buffer_weights:
                return pl.BlockSpec(a.shape, idx, pipeline_mode=pl.Buffered(1))
            return pl.BlockSpec(a.shape, idx)

        return pl.pallas_call(
            ae_mlp_kernel,
            out_shape=jax.ShapeDtypeStruct((padded_B, out_pad), jnp.bfloat16),
            grid=(n_tiles,),
            in_specs=[pl.BlockSpec((TB, in_pad), lambda i: (i, 0))]
                     + [resident_spec(a) for a in weights],
            out_specs=pl.BlockSpec((TB, out_pad), lambda i: (i, 0)),
            compiler_params=pltpu.CompilerParams(
                dimension_semantics=("parallel",)),      # shards batch tiles across v7x TCs
            cost_estimate=pl.CostEstimate(flops=flops, transcendentals=0,
                                          bytes_accessed=bytes_accessed),
        )(x_flat, *weights)

    try:
        out_padded = build_and_call(buffer_weights=True)
    except Exception:
        # Older/other Pallas builds may reject Buffered(1); double-buffered
        # resident weights are only ~0.75 MiB extra VMEM, so fall back cleanly.
        out_padded = build_and_call(buffer_weights=False)

    return out_padded[:B, :NUM_CLASSES].astype(jnp.float32)


# --------------------------------------------------------------------------
# Parameter init (PyTorch-style) and kernel-layout preparation
# --------------------------------------------------------------------------
def init_params(rank, key):
    """f32 params, uniform(-1/sqrt(fan_in), 1/sqrt(fan_in)), W: (in, out)."""
    def linear(key, fan_in, fan_out, bias):
        kw, kb = jax.random.split(key)
        bound = 1.0 / jnp.sqrt(fan_in)
        w = jax.random.uniform(kw, (fan_in, fan_out), jnp.float32, -bound, bound)
        if bias:
            b = jax.random.uniform(kb, (1, fan_out), jnp.float32, -bound, bound)
            return w, b
        return (w,)

    keys = jax.random.split(key, 7)
    (w1,)    = linear(keys[0], IN_FEATURES, rank, bias=False)
    (w2, b2) = linear(keys[1], rank, HIDDEN, bias=True)
    (w3,)    = linear(keys[2], HIDDEN, rank, bias=False)
    (w4, b4) = linear(keys[3], rank, HIDDEN, bias=True)
    (w5,)    = linear(keys[4], HIDDEN, rank, bias=False)
    (w6, b6) = linear(keys[5], rank, NUM_CLASSES, bias=True)
    return (w1, w2, b2, w3, w4, b4, w5, w6, b6)


def prepare_params(params):
    """Kernel layout: pad K (784->896), rank and logits to 128-lane multiples,
    fuse W5@W6 in f32 (exact: no nonlinearity between them), weights -> bf16,
    biases stay f32.  Zero padding is mathematically a no-op."""
    w1, w2, b2, w3, w4, b4, w5, w6, b6 = params
    rank = w1.shape[1]
    r_pad = _round_up(rank, 128)
    in_pad = _round_up(IN_FEATURES, 128)      # 896
    out_pad = _round_up(NUM_CLASSES, 128)     # 128

    w56 = w5 @ w6                             # (512, 10), exact f32 fusion

    def pad(a, rows=None, cols=None):
        pr = 0 if rows is None else rows - a.shape[0]
        pc = 0 if cols is None else cols - a.shape[1]
        return jnp.pad(a, ((0, pr), (0, pc)))

    return (
        pad(w1, rows=in_pad, cols=r_pad).astype(jnp.bfloat16),   # (896, Rp)
        pad(w2, rows=r_pad).astype(jnp.bfloat16),                # (Rp, 512)
        b2.astype(jnp.float32),                                  # (1, 512)
        pad(w3, cols=r_pad).astype(jnp.bfloat16),                # (512, Rp)
        pad(w4, rows=r_pad).astype(jnp.bfloat16),                # (Rp, 512)
        b4.astype(jnp.float32),                                  # (1, 512)
        pad(w56, cols=out_pad).astype(jnp.bfloat16),             # (512, 128)
        pad(b6, cols=out_pad).astype(jnp.float32),               # (1, 128)
    )


# --------------------------------------------------------------------------
# References: (a) true f32 module semantics, (b) kernel's bf16/f32-accum chain
# --------------------------------------------------------------------------
def reference_forward_f32(x_nchw, params):
    w1, w2, b2, w3, w4, b4, w5, w6, b6 = params
    h = x_nchw.reshape(x_nchw.shape[0], -1)
    h = h @ w1
    h = jnp.maximum(h @ w2 + b2, 0.0)
    h = h @ w3
    h = jnp.maximum(h @ w4 + b4, 0.0)
    h = h @ w5
    return h @ w6 + b6


def reference_forward_bf16(x_nchw, kernel_params):
    w1, w2, b2, w3, w4, b4, w56, b6 = kernel_params
    in_pad = w1.shape[0]
    bf = jnp.bfloat16
    h = x_nchw.reshape(x_nchw.shape[0], -1).astype(jnp.float32)
    h = jnp.pad(h, ((0, 0), (0, in_pad - h.shape[1])))
    h = jnp.dot(h.astype(bf), w1, preferred_element_type=jnp.float32)
    h = jnp.dot(h.astype(bf), w2, preferred_element_type=jnp.float32) + b2
    h = jnp.maximum(h, 0.0)
    h = jnp.dot(h.astype(bf), w3, preferred_element_type=jnp.float32)
    h = jnp.dot(h.astype(bf), w4, preferred_element_type=jnp.float32) + b4
    h = jnp.maximum(h, 0.0)
    h = jnp.dot(h.astype(bf), w56, preferred_element_type=jnp.float32) + b6
    return h.astype(bf).astype(jnp.float32)[:, :NUM_CLASSES]


if __name__ == "__main__":
    rank = 32
    B = 8
    key = jax.random.PRNGKey(0)
    kx, kp = jax.random.split(key)

    # MNIST-like input, NCHW (matches nn.Flatten semantics of the module).
    x = jax.random.normal(kx, (B, 1, 28, 28), jnp.float32)
    params = init_params(rank, kp)
    kernel_params = prepare_params(params)

    out = jax.block_until_ready(ae_forward(x, kernel_params))
    assert out.shape == (B, NUM_CLASSES), out.shape

    # Tight check against a reference mirroring the kernel's dtype chain.
    ref_bf16 = reference_forward_bf16(x, kernel_params)
    assert jnp.allclose(out, ref_bf16, atol=2e-2, rtol=2e-2), (
        float(jnp.max(jnp.abs(out - ref_bf16))))

    # Looser sanity check against the true f32 PyTorch-semantics reference.
    ref_f32 = reference_forward_f32(x, params)
    assert jnp.allclose(out, ref_f32, atol=5e-2, rtol=5e-2), (
        float(jnp.max(jnp.abs(out - ref_f32))))

    print("KERNEL_OK")
</pallas_src>

<mosaic_0001>
module attributes {stable_mosaic.version = 11 : i64} {
  func.func @ae_mlp_kernel(%arg0: i32, %arg1: memref<16x896xf32, #tpu.memory_space<vmem>>, %arg2: memref<896x128xbf16, #tpu.memory_space<vmem>>, %arg3: memref<128x512xbf16, #tpu.memory_space<vmem>>, %arg4: memref<1x512xf32, #tpu.memory_space<vmem>>, %arg5: memref<512x128xbf16, #tpu.memory_space<vmem>>, %arg6: memref<128x512xbf16, #tpu.memory_space<vmem>>, %arg7: memref<1x512xf32, #tpu.memory_space<vmem>>, %arg8: memref<512x128xbf16, #tpu.memory_space<vmem>>, %arg9: memref<1x128xf32, #tpu.memory_space<vmem>>, %arg10: memref<16x128xbf16, #tpu.memory_space<vmem>>) attributes {dimension_semantics = [#tpu.dimension_semantics<parallel>], iteration_bounds = array<i64: 1>, scalar_prefetch = 0 : i64, scratch_operands = 0 : i64, tpu.core_type = #tpu.core_type<tc>, window_params = [{transform_indices = @transform_0, window_bounds = array<i64: 16, 896>}, {pipeline_mode = #tpu.pipeline_mode<synchronous>, transform_indices = @transform_1, window_bounds = array<i64: 896, 128>}, {pipeline_mode = #tpu.pipeline_mode<synchronous>, transform_indices = @transform_2, window_bounds = array<i64: 128, 512>}, {pipeline_mode = #tpu.pipeline_mode<synchronous>, transform_indices = @transform_3, window_bounds = array<i64: 1, 512>}, {pipeline_mode = #tpu.pipeline_mode<synchronous>, transform_indices = @transform_4, window_bounds = array<i64: 512, 128>}, {pipeline_mode = #tpu.pipeline_mode<synchronous>, transform_indices = @transform_5, window_bounds = array<i64: 128, 512>}, {pipeline_mode = #tpu.pipeline_mode<synchronous>, transform_indices = @transform_6, window_bounds = array<i64: 1, 512>}, {pipeline_mode = #tpu.pipeline_mode<synchronous>, transform_indices = @transform_7, window_bounds = array<i64: 512, 128>}, {pipeline_mode = #tpu.pipeline_mode<synchronous>, transform_indices = @transform_8, window_bounds = array<i64: 1, 128>}, {transform_indices = @transform_9, window_bounds = array<i64: 16, 128>}]} {
    %c0 = arith.constant 0 : index
    %c0_0 = arith.constant 0 : index
    %0 = vector.load %arg1[%c0, %c0_0] : memref<16x896xf32, #tpu.memory_space<vmem>>, vector<16x896xf32>
    %1 = arith.truncf %0 : vector<16x896xf32> to vector<16x896xbf16>
    %c0_1 = arith.constant 0 : index
    %c0_2 = arith.constant 0 : index
    %2 = vector.load %arg2[%c0_1, %c0_2] : memref<896x128xbf16, #tpu.memory_space<vmem>>, vector<896x128xbf16>
    %cst = arith.constant dense<0.000000e+00> : vector<16x128xf32>
    %3 = tpu.matmul %1, %2, %cst {dimension_numbers = #tpu.dot_dimension_numbers<[1], [0], [0], [1], [0, 0, 1, 1], [], []>} : vector<16x896xbf16>, vector<896x128xbf16>, vector<16x128xf32> -> vector<16x128xf32>
    %4 = arith.truncf %3 : vector<16x128xf32> to vector<16x128xbf16>
    %c0_3 = arith.constant 0 : index
    %c0_4 = arith.constant 0 : index
    %5 = vector.load %arg3[%c0_3, %c0_4] : memref<128x512xbf16, #tpu.memory_space<vmem>>, vector<128x512xbf16>
    %cst_5 = arith.constant dense<0.000000e+00> : vector<16x512xf32>
    %6 = tpu.matmul %4, %5, %cst_5 {dimension_numbers = #tpu.dot_dimension_numbers<[1], [0], [0], [1], [0, 0, 1, 1], [], []>} : vector<16x128xbf16>, vector<128x512xbf16>, vector<16x512xf32> -> vector<16x512xf32>
    %c0_6 = arith.constant 0 : index
    %c0_7 = arith.constant 0 : index
    %7 = vector.load %arg4[%c0_6, %c0_7] : memref<1x512xf32, #tpu.memory_space<vmem>>, vector<1x512xf32>
    %8 = vector.broadcast %7 : vector<1x512xf32> to vector<16x512xf32>
    %9 = arith.addf %6, %8 : vector<16x512xf32>
    %cst_8 = arith.constant 0.000000e+00 : f32
    %10 = vector.broadcast %cst_8 : f32 to vector<16x512xf32>
    %11 = arith.maximumf %9, %10 : vector<16x512xf32>
    %12 = arith.truncf %11 : vector<16x512xf32> to vector<16x512xbf16>
    %c0_9 = arith.constant 0 : index
    %c0_10 = arith.constant 0 : index
    %13 = vector.load %arg5[%c0_9, %c0_10] : memref<512x128xbf16, #tpu.memory_space<vmem>>, vector<512x128xbf16>
    %cst_11 = arith.constant dense<0.000000e+00> : vector<16x128xf32>
    %14 = tpu.matmul %12, %13, %cst_11 {dimension_numbers = #tpu.dot_dimension_numbers<[1], [0], [0], [1], [0, 0, 1, 1], [], []>} : vector<16x512xbf16>, vector<512x128xbf16>, vector<16x128xf32> -> vector<16x128xf32>
    %15 = arith.truncf %14 : vector<16x128xf32> to vector<16x128xbf16>
    %c0_12 = arith.constant 0 : index
    %c0_13 = arith.constant 0 : index
    %16 = vector.load %arg6[%c0_12, %c0_13] : memref<128x512xbf16, #tpu.memory_space<vmem>>, vector<128x512xbf16>
    %cst_14 = arith.constant dense<0.000000e+00> : vector<16x512xf32>
    %17 = tpu.matmul %15, %16, %cst_14 {dimension_numbers = #tpu.dot_dimension_numbers<[1], [0], [0], [1], [0, 0, 1, 1], [], []>} : vector<16x128xbf16>, vector<128x512xbf16>, vector<16x512xf32> -> vector<16x512xf32>
    %c0_15 = arith.constant 0 : index
    %c0_16 = arith.constant 0 : index
    %18 = vector.load %arg7[%c0_15, %c0_16] : memref<1x512xf32, #tpu.memory_space<vmem>>, vector<1x512xf32>
    %19 = vector.broadcast %18 : vector<1x512xf32> to vector<16x512xf32>
    %20 = arith.addf %17, %19 : vector<16x512xf32>
    %cst_17 = arith.constant 0.000000e+00 : f32
    %21 = vector.broadcast %cst_17 : f32 to vector<16x512xf32>
    %22 = arith.maximumf %20, %21 : vector<16x512xf32>
    %23 = arith.truncf %22 : vector<16x512xf32> to vector<16x512xbf16>
    %c0_18 = arith.constant 0 : index
    %c0_19 = arith.constant 0 : index
    %24 = vector.load %arg8[%c0_18, %c0_19] : memref<512x128xbf16, #tpu.memory_space<vmem>>, vector<512x128xbf16>
    %cst_20 = arith.constant dense<0.000000e+00> : vector<16x128xf32>
    %25 = tpu.matmul %23, %24, %cst_20 {dimension_numbers = #tpu.dot_dimension_numbers<[1], [0], [0], [1], [0, 0, 1, 1], [], []>} : vector<16x512xbf16>, vector<512x128xbf16>, vector<16x128xf32> -> vector<16x128xf32>
    %c0_21 = arith.constant 0 : index
    %c0_22 = arith.constant 0 : index
    %26 = vector.load %arg9[%c0_21, %c0_22] : memref<1x128xf32, #tpu.memory_space<vmem>>, vector<1x128xf32>
    %27 = vector.broadcast %26 : vector<1x128xf32> to vector<16x128xf32>
    %28 = arith.addf %25, %27 : vector<16x128xf32>
    %29 = arith.truncf %28 : vector<16x128xf32> to vector<16x128xbf16>
    %c0_23 = arith.constant 0 : index
    %c0_24 = arith.constant 0 : index
    %30 = vector.load %arg10[%c0_23, %c0_24] : memref<16x128xbf16, #tpu.memory_space<vmem>>, vector<16x128xbf16>
    tpu.vector_store %arg10[%c0_23, %c0_24], %29 {strides = array<i32>} : memref<16x128xbf16, #tpu.memory_space<vmem>>, vector<16x128xbf16>,
    return
  }
  func.func @transform_0(%arg0: i32) -> (i32, i32) {
    %c0_i32 = arith.constant 0 : i32
    %c0_i32_0 = arith.constant 0 : i32
    return %arg0, %c0_i32 : i32, i32
  }
  func.func @transform_1(%arg0: i32) -> (i32, i32) {
    %c0_i32 = arith.constant 0 : i32
    %c0_i32_0 = arith.constant 0 : i32
    %c0_i32_1 = arith.constant 0 : i32
    return %c0_i32, %c0_i32_0 : i32, i32
  }
  func.func @transform_2(%arg0: i32) -> (i32, i32) {
    %c0_i32 = arith.constant 0 : i32
    %c0_i32_0 = arith.constant 0 : i32
    %c0_i32_1 = arith.constant 0 : i32
    return %c0_i32, %c0_i32_0 : i32, i32
  }
  func.func @transform_3(%arg0: i32) -> (i32, i32) {
    %c0_i32 = arith.constant 0 : i32
    %c0_i32_0 = arith.constant 0 : i32
    %c0_i32_1 = arith.constant 0 : i32
    return %c0_i32, %c0_i32_0 : i32, i32
  }
  func.func @transform_4(%arg0: i32) -> (i32, i32) {
    %c0_i32 = arith.constant 0 : i32
    %c0_i32_0 = arith.constant 0 : i32
    %c0_i32_1 = arith.constant 0 : i32
    return %c0_i32, %c0_i32_0 : i32, i32
  }
  func.func @transform_5(%arg0: i32) -> (i32, i32) {
    %c0_i32 = arith.constant 0 : i32
    %c0_i32_0 = arith.constant 0 : i32
    %c0_i32_1 = arith.constant 0 : i32
    return %c0_i32, %c0_i32_0 : i32, i32
  }
  func.func @transform_6(%arg0: i32) -> (i32, i32) {
    %c0_i32 = arith.constant 0 : i32
    %c0_i32_0 = arith.constant 0 : i32
    %c0_i32_1 = arith.constant 0 : i32
    return %c0_i32, %c0_i32_0 : i32, i32
  }
  func.func @transform_7(%arg0: i32) -> (i32, i32) {
    %c0_i32 = arith.constant 0 : i32
    %c0_i32_0 = arith.constant 0 : i32
    %c0_i32_1 = arith.constant 0 : i32
    return %c0_i32, %c0_i32_0 : i32, i32
  }
  func.func @transform_8(%arg0: i32) -> (i32, i32) {
    %c0_i32 = arith.constant 0 : i32
    %c0_i32_0 = arith.constant 0 : i32
    %c0_i32_1 = arith.constant 0 : i32
    return %c0_i32, %c0_i32_0 : i32, i32
  }
  func.func @transform_9(%arg0: i32) -> (i32, i32) {
    %c0_i32 = arith.constant 0 : i32
    %c0_i32_0 = arith.constant 0 : i32
    return %arg0, %c0_i32 : i32, i32
  }
}

module attributes {stable_mosaic.version = 11 : i64} {
  func.func @ae_mlp_kernel(%arg0: i32, %arg1: memref<16x896xf32, #tpu.memory_space<vmem>>, %arg2: memref<896x128xbf16, #tpu.memory_space<vmem>>, %arg3: memref<128x512xbf16, #tpu.memory_space<vmem>>, %arg4: memref<1x512xf32, #tpu.memory_space<vmem>>, %arg5: memref<512x128xbf16, #tpu.memory_space<vmem>>, %arg6: memref<128x512xbf16, #tpu.memory_space<vmem>>, %arg7: memref<1x512xf32, #tpu.memory_space<vmem>>, %arg8: memref<512x128xbf16, #tpu.memory_space<vmem>>, %arg9: memref<1x128xf32, #tpu.memory_space<vmem>>, %arg10: memref<16x128xbf16, #tpu.memory_space<vmem>>) attributes {dimension_semantics = [#tpu.dimension_semantics<parallel>], iteration_bounds = array<i64: 1>, scalar_prefetch = 0 : i64, scratch_operands = 0 : i64, tpu.core_type = #tpu.core_type<tc>, window_params = [{transform_indices = @transform_0, window_bounds = array<i64: 16, 896>}, {pipeline_mode = #tpu.pipeline_mode<synchronous>, transform_indices = @transform_1, window_bounds = array<i64: 896, 128>}, {pipeline_mode = #tpu.pipeline_mode<synchronous>, transform_indices = @transform_2, window_bounds = array<i64: 128, 512>}, {pipeline_mode = #tpu.pipeline_mode<synchronous>, transform_indices = @transform_3, window_bounds = array<i64: 1, 512>}, {pipeline_mode = #tpu.pipeline_mode<synchronous>, transform_indices = @transform_4, window_bounds = array<i64: 512, 128>}, {pipeline_mode = #tpu.pipeline_mode<synchronous>, transform_indices = @transform_5, window_bounds = array<i64: 128, 512>}, {pipeline_mode = #tpu.pipeline_mode<synchronous>, transform_indices = @transform_6, window_bounds = array<i64: 1, 512>}, {pipeline_mode = #tpu.pipeline_mode<synchronous>, transform_indices = @transform_7, window_bounds = array<i64: 512, 128>}, {pipeline_mode = #tpu.pipeline_mode<synchronous>, transform_indices = @transform_8, window_bounds = array<i64: 1, 128>}, {transform_indices = @transform_9, window_bounds = array<i64: 16, 128>}]} {
    %c0 = arith.constant 0 : index
    %c0_0 = arith.constant 0 : index
    %0 = vector.load %arg1[%c0, %c0_0] : memref<16x896xf32, #tpu.memory_space<vmem>>, vector<16x896xf32>
    %1 = arith.truncf %0 : vector<16x896xf32> to vector<16x896xbf16>
    %c0_1 = arith.constant 0 : index
    %c0_2 = arith.constant 0 : index
    %2 = vector.load %arg2[%c0_1, %c0_2] : memref<896x128xbf16, #tpu.memory_space<vmem>>, vector<896x128xbf16>
    %cst = arith.constant dense<0.000000e+00> : vector<16x128xf32>
    %3 = tpu.matmul %1, %2, %cst {dimension_numbers = #tpu.dot_dimension_numbers<[1], [0], [0], [1], [0, 0, 1, 1], [], []>} : vector<16x896xbf16>, vector<896x128xbf16>, vector<16x128xf32> -> vector<16x128xf32>
    %4 = arith.truncf %3 : vector<16x128xf32> to vector<16x128xbf16>
    %c0_3 = arith.constant 0 : index
    %c0_4 = arith.constant 0 : index
    %5 = vector.load %arg3[%c0_3, %c0_4] : memref<128x512xbf16, #tpu.memory_space<vmem>>, vector<128x512xbf16>
    %cst_5 = arith.constant dense<0.000000e+00> : vector<16x512xf32>
    %6 = tpu.matmul %4, %5, %cst_5 {dimension_numbers = #tpu.dot_dimension_numbers<[1], [0], [0], [1], [0, 0, 1, 1], [], []>} : vector<16x128xbf16>, vector<128x512xbf16>, vector<16x512xf32> -> vector<16x512xf32>
    %c0_6 = arith.constant 0 : index
    %c0_7 = arith.constant 0 : index
    %7 = vector.load %arg4[%c0_6, %c0_7] : memref<1x512xf32, #tpu.memory_space<vmem>>, vector<1x512xf32>
    %8 = vector.broadcast %7 : vector<1x512xf32> to vector<16x512xf32>
    %9 = arith.addf %6, %8 : vector<16x512xf32>
    %cst_8 = arith.constant 0.000000e+00 : f32
    %10 = vector.broadcast %cst_8 : f32 to vector<16x512xf32>
    %11 = arith.maximumf %9, %10 : vector<16x512xf32>
    %12 = arith.truncf %11 : vector<16x512xf32> to vector<16x512xbf16>
    %c0_9 = arith.constant 0 : index
    %c0_10 = arith.constant 0 : index
    %13 = vector.load %arg5[%c0_9, %c0_10] : memref<512x128xbf16, #tpu.memory_space<vmem>>, vector<512x128xbf16>
    %cst_11 = arith.constant dense<0.000000e+00> : vector<16x128xf32>
    %14 = tpu.matmul %12, %13, %cst_11 {dimension_numbers = #tpu.dot_dimension_numbers<[1], [0], [0], [1], [0, 0, 1, 1], [], []>} : vector<16x512xbf16>, vector<512x128xbf16>, vector<16x128xf32> -> vector<16x128xf32>
    %15 = arith.truncf %14 : vector<16x128xf32> to vector<16x128xbf16>
    %c0_12 = arith.constant 0 : index
    %c0_13 = arith.constant 0 : index
    %16 = vector.load %arg6[%c0_12, %c0_13] : memref<128x512xbf16, #tpu.memory_space<vmem>>, vector<128x512xbf16>
    %cst_14 = arith.constant dense<0.000000e+00> : vector<16x512xf32>
    %17 = tpu.matmul %15, %16, %cst_14 {dimension_numbers = #tpu.dot_dimension_numbers<[1], [0], [0], [1], [0, 0, 1, 1], [], []>} : vector<16x128xbf16>, vector<128x512xbf16>, vector<16x512xf32> -> vector<16x512xf32>
    %c0_15 = arith.constant 0 : index
    %c0_16 = arith.constant 0 : index
    %18 = vector.load %arg7[%c0_15, %c0_16] : memref<1x512xf32, #tpu.memory_space<vmem>>, vector<1x512xf32>
    %19 = vector.broadcast %18 : vector<1x512xf32> to vector<16x512xf32>
    %20 = arith.addf %17, %19 : vector<16x512xf32>
    %cst_17 = arith.constant 0.000000e+00 : f32
    %21 = vector.broadcast %cst_17 : f32 to vector<16x512xf32>
    %22 = arith.maximumf %20, %21 : vector<16x512xf32>
    %23 = arith.truncf %22 : vector<16x512xf32> to vector<16x512xbf16>
    %c0_18 = arith.constant 0 : index
    %c0_19 = arith.constant 0 : index
    %24 = vector.load %arg8[%c0_18, %c0_19] : memref<512x128xbf16, #tpu.memory_space<vmem>>, vector<512x128xbf16>
    %cst_20 = arith.constant dense<0.000000e+00> : vector<16x128xf32>
    %25 = tpu.matmul %23, %24, %cst_20 {dimension_numbers = #tpu.dot_dimension_numbers<[1], [0], [0], [1], [0, 0, 1, 1], [], []>} : vector<16x512xbf16>, vector<512x128xbf16>, vector<16x128xf32> -> vector<16x128xf32>
    %c0_21 = arith.constant 0 : index
    %c0_22 = arith.constant 0 : index
    %26 = vector.load %arg9[%c0_21, %c0_22] : memref<1x128xf32, #tpu.memory_space<vmem>>, vector<1x128xf32>
    %27 = vector.broadcast %26 : vector<1x128xf32> to vector<16x128xf32>
    %28 = arith.addf %25, %27 : vector<16x128xf32>
    %29 = arith.truncf %28 : vector<16x128xf32> to vector<16x128xbf16>
    %c0_23 = arith.constant 0 : index
    %c0_24 = arith.constant 0 : index
    %30 = vector.load %arg10[%c0_23, %c0_24] : memref<16x128xbf16, #tpu.memory_space<vmem>>, vector<16x128xbf16>
    tpu.vector_store %arg10[%c0_23, %c0_24], %29 {strides = array<i32>} : memref<16x128xbf16, #tpu.memory_space<vmem>>, vector<16x128xbf16>,
    return
  }
  func.func @transform_0(%arg0: i32) -> (i32, i32) {
    %c0_i32 = arith.constant 0 : i32
    %c0_i32_0 = arith.constant 0 : i32
    return %arg0, %c0_i32 : i32, i32
  }
  func.func @transform_1(%arg0: i32) -> (i32, i32) {
    %c0_i32 = arith.constant 0 : i32
    %c0_i32_0 = arith.constant 0 : i32
    %c0_i32_1 = arith.constant 0 : i32
    return %c0_i32, %c0_i32_0 : i32, i32
  }
  func.func @transform_2(%arg0: i32) -> (i32, i32) {
    %c0_i32 = arith.constant 0 : i32
    %c0_i32_0 = arith.constant 0 : i32
    %c0_i32_1 = arith.constant 0 : i32
    return %c0_i32, %c0_i32_0 : i32, i32
  }
  func.func @transform_3(%arg0: i32) -> (i32, i32) {
    %c0_i32 = arith.constant 0 : i32
    %c0_i32_0 = arith.constant 0 : i32
    %c0_i32_1 = arith.constant 0 : i32
    return %c0_i32, %c0_i32_0 : i32, i32
  }
  func.func @transform_4(%arg0: i32) -> (i32, i32) {
    %c0_i32 = arith.constant 0 : i32
    %c0_i32_0 = arith.constant 0 : i32
    %c0_i32_1 = arith.constant 0 : i32
    return %c0_i32, %c0_i32_0 : i32, i32
  }
  func.func @transform_5(%arg0: i32) -> (i32, i32) {
    %c0_i32 = arith.constant 0 : i32
    %c0_i32_0 = arith.constant 0 : i32
    %c0_i32_1 = arith.constant 0 : i32
    return %c0_i32, %c0_i32_0 : i32, i32
  }
  func.func @transform_6(%arg0: i32) -> (i32, i32) {
    %c0_i32 = arith.constant 0 : i32
    %c0_i32_0 = arith.constant 0 : i32
    %c0_i32_1 = arith.constant 0 : i32
    return %c0_i32, %c0_i32_0 : i32, i32
  }
  func.func @transform_7(%arg0: i32) -> (i32, i32) {
    %c0_i32 = arith.constant 0 : i32
    %c0_i32_0 = arith.constant 0 : i32
    %c0_i32_1 = arith.constant 0 : i32
    return %c0_i32, %c0_i32_0 : i32, i32
  }
  func.func @transform_8(%arg0: i32) -> (i32, i32) {
    %c0_i32 = arith.constant 0 : i32
    %c0_i32_0 = arith.constant 0 : i32
    %c0_i32_1 = arith.constant 0 : i32
    return %c0_i32, %c0_i32_0 : i32, i32
  }
  func.func @transform_9(%arg0: i32) -> (i32, i32) {
    %c0_i32 = arith.constant 0 : i32
    %c0_i32_0 = arith.constant 0 : i32
    return %arg0, %c0_i32 : i32, i32
  }
}

</mosaic_0001>

<bundles_post_ra>
// kernel: tpu_custom_call.1
= control target key start
LH: loop header
LB: loop body
LE: loop exit
PB: predicated region body
PF: predicated region fallthrough
CT: control target
= control target key end

     0   :  { %14 = vsyncpa [#allocation3], 0  ;;  %s3074_s0 = inlined_call_operand.hbm [shape: f32[16,896], index: 0, kind: input, shape index: {}]   ;;  %s3075_s1 = inlined_call_operand.hbm [shape: bf16[896,128], index: 1, kind: input, shape index: {}]   ;;  %s3076_s2 = inlined_call_operand.hbm [shape: bf16[128,512], index: 2, kind: input, shape index: {}]   ;;  %s3077_s3 = inlined_call_operand.vmem [shape: f32[1,512], index: 3, kind: input, shape index: {}]   ;;  %s3078_s4 = inlined_call_operand.hbm [shape: bf16[512,128], index: 4, kind: input, shape index: {}]   ;;  %s3079_s5 = inlined_call_operand.hbm [shape: bf16[128,512], index: 5, kind: input, shape index: {}]   ;;  %s3080_s6 = inlined_call_operand.vmem [shape: f32[1,512], index: 6, kind: input, shape index: {}]   ;;  %s3081_s7 = inlined_call_operand.hbm [shape: bf16[512,128], index: 7, kind: input, shape index: {}]   ;;  %s3082_s8 = inlined_call_operand.vmem [shape: f32[1,128], index: 8, kind: input, shape index: {}]   ;;  %s3083_s9 = inlined_call_operand.hbm [shape: bf16[16,128], index: 9, kind: output, shape index: {}]  }
   0x1   :  { %15 = vsyncpa [#allocation6], 0 }
   0x2   :  { %16 = vsyncpa [#allocation9], 0 }
   0x3   :  { %17 = vsyncpa [#allocation12], 0 }
   0x4   :  { %18 = vsyncpa [#allocation4], 0  ;;  %s2861_s30 = smov [#allocation5]   ;;  %s2697_s13 = scalar_lea.hbm %s3075_s1, 7168 }
   0x5   :  { %s36_s10 = sshll.u32 %s2861_s30, 4  ;;  %p2698_p0 = scmp.ne.s32.totalorder %s3075_s1, %s2697_s13  ;;  %s37_s10 = int_to_ptr.vmem [resolvable:$true] %s36_s10 }
   0x6   :  { %p2701_p1 = scmp.lt.u32.totalorder %s2697_s13, %s3075_s1 }
   0x8   :  { %p2703_p2 = pnand %p2701_p1, %p2698_p0 }
   0xa   :  { %2706 = shalt.err (!%p2703_p2)
}
   0xb   :  { %s2707_s18 = scalar_lea.vmem %s37_s10, 7168  ;;  %p2712_p4 = scmp.lt.s32.totalorder %s37_s10, %s37_s10 }
   0xc   :  { %p2708_p3 = scmp.ne.s32.totalorder %s37_s10, %s2707_s18  ;;  %p2713_p5 = scmp.lt.s32.totalorder %s2707_s18, %s2707_s18 }
   0xe   :  { %p2714_p6 = por %p2713_p5, %p2712_p4 }
  0x10   :  { %p2715_p7 = pnand %p2714_p6, %p2708_p3 }
  0x12   :  { %2718 = shalt.err (!%p2715_p7)
}
  0x13   :  { %s2862_s19 = smov 64   ;;  %s2863_s20 = smov 4  }
  0x14   :  { %42 = dma.hbm_to_vmem [thread:$0]  %s3075_s1, 7168, %s37_s10, [#allocation6], %s2862_s19, %s2862_s19, %s2863_s20  }
  0x15   :  { %s2864_s23 = smov [#allocation8]   ;;  %s2865_s25 = smov [#allocation2]  }
  0x16   :  { %s62_s24 = sshll.u32 %s2864_s23, 4  ;;  %s24_s26 = sshll.u32 %s2865_s25, 4  ;;  %s63_s24 = int_to_ptr.vmem [resolvable:$true] %s62_s24  ;;  %s25_s26 = int_to_ptr.vmem [resolvable:$true] %s24_s26 }
  0x17   :  { %s2719_s29 = scalar_lea.hbm %s3078_s4, 4096 }
  0x18   :  { %p2720_p8 = scmp.ne.s32.totalorder %s3078_s4, %s2719_s29  ;;  %p2723_p9 = scmp.lt.u32.totalorder %s2719_s29, %s3078_s4 }
  0x1a   :  { %p2725_p10 = pnand %p2723_p9, %p2720_p8 }
  0x1c   :  { %2728 = shalt.err (!%p2725_p10)
}
  0x1d   :  { %s2729_s1 = scalar_lea.vmem %s63_s24, 4096  ;;  %p2734_p12 = scmp.lt.s32.totalorder %s63_s24, %s63_s24 }
  0x1e   :  { %p2730_p11 = scmp.ne.s32.totalorder %s63_s24, %s2729_s1  ;;  %p2735_p13 = scmp.lt.s32.totalorder %s2729_s1, %s2729_s1 }
  0x20   :  { %p2736_p0 = por %p2735_p13, %p2734_p12 }
  0x22   :  { %p2737_p1 = pnand %p2736_p0, %p2730_p11 }
  0x24   :  { %2740 = shalt.err (!%p2737_p1)
}
  0x25   :  { %68 = dma.hbm_to_vmem [thread:$0]  %s3078_s4, 4096, %s63_s24, [#allocation9], %s2862_s19, %s2862_s19, %s2863_s20  }
  0x26   :  { %s2741_s17 = scalar_lea.hbm %s3074_s0, 1792 }
  0x27   :  { %p2742_p2 = scmp.ne.s32.totalorder %s3074_s0, %s2741_s17  ;;  %p2745_p3 = scmp.lt.u32.totalorder %s2741_s17, %s3074_s0 }
  0x29   :  { %p2747_p4 = pnand %p2745_p3, %p2742_p2 }
  0x2b   :  { %2750 = shalt.err (!%p2747_p4)
}
  0x2c   :  { %s2751_s25 = scalar_lea.vmem %s25_s26, 1792  ;;  %p2756_p6 = scmp.lt.s32.totalorder %s25_s26, %s25_s26 }
  0x2d   :  { %p2752_p5 = scmp.ne.s32.totalorder %s25_s26, %s2751_s25  ;;  %p2757_p7 = scmp.lt.s32.totalorder %s2751_s25, %s2751_s25 }
  0x2f   :  { %p2758_p8 = por %p2757_p7, %p2756_p6 }
  0x31   :  { %p2759_p9 = pnand %p2758_p8, %p2752_p5 }
  0x33   :  { %2762 = shalt.err (!%p2759_p9)
}
  0x34   :  { %s2866_s4 = smov 896   ;;  %s2867_s24 = smov 56  }
  0x35   :  { %30 = dma.hbm_to_vmem [thread:$0]  %s3074_s0, 1792, %s25_s26, [#allocation3], %s2866_s4, %s2866_s4, %s2867_s24  }
  0x36   :  { %s2868_s29 = smov [#allocation7]   ;;  %s2763_s13 = scalar_lea.hbm %s3076_s2, 4096 }
  0x37   :  { %s48_s30 = sshll.u32 %s2868_s29, 4  ;;  %p2764_p10 = scmp.ne.s32.totalorder %s3076_s2, %s2763_s13  ;;  %s49_s30 = int_to_ptr.vmem [resolvable:$true] %s48_s30 }
  0x38   :  { %p2767_p11 = scmp.lt.u32.totalorder %s2763_s13, %s3076_s2 }
  0x3a   :  { %p2769_p12 = pnand %p2767_p11, %p2764_p10 }
  0x3c   :  { %2772 = shalt.err (!%p2769_p12)
}
  0x3d   :  { %s2773_s16 = scalar_lea.vmem %s49_s30, 4096  ;;  %p2778_p0 = scmp.lt.s32.totalorder %s49_s30, %s49_s30 }
  0x3e   :  { %p2774_p13 = scmp.ne.s32.totalorder %s49_s30, %s2773_s16  ;;  %p2779_p1 = scmp.lt.s32.totalorder %s2773_s16, %s2773_s16 }
  0x40   :  { %p2780_p2 = por %p2779_p1, %p2778_p0 }
  0x42   :  { %p2781_p3 = pnand %p2780_p2, %p2774_p13 }
  0x44   :  { %2784 = shalt.err (!%p2781_p3)
}
  0x45   :  { %s2869_s0 = smov 256   ;;  %s2870_s26 = smov 16  }
  0x46   :  { %54 = dma.hbm_to_vmem [thread:$0]  %s3076_s2, 4096, %s49_s30, [#allocation6], %s2869_s0, %s2869_s0, %s2870_s26  }
  0x47   :  { %s2871_s21 = smov [#allocation10]   ;;  %s2872_s23 = smov [#allocation11]  }
  0x48   :  { %s74_s22 = sshll.u32 %s2871_s21, 4  ;;  %s88_s25 = sshll.u32 %s2872_s23, 4  ;;  %s75_s22 = int_to_ptr.vmem [resolvable:$true] %s74_s22  ;;  %s2981_s25 = int_to_ptr.vmem [resolvable:$true] %s88_s25 }
  0x49   :  { %s2785_s27 = scalar_lea.hbm %s3079_s5, 4096 }
  0x4a   :  { %p2786_p4 = scmp.ne.s32.totalorder %s3079_s5, %s2785_s27  ;;  %p2789_p5 = scmp.lt.u32.totalorder %s2785_s27, %s3079_s5 }
  0x4c   :  { %p2791_p6 = pnand %p2789_p5, %p2786_p4 }
  0x4e   :  { %2794 = shalt.err (!%p2791_p6)
}
  0x4f   :  { %s2795_s2 = scalar_lea.vmem %s75_s22, 4096  ;;  %p2800_p8 = scmp.lt.s32.totalorder %s75_s22, %s75_s22 }
  0x50   :  { %p2796_p7 = scmp.ne.s32.totalorder %s75_s22, %s2795_s2  ;;  %p2801_p9 = scmp.lt.s32.totalorder %s2795_s2, %s2795_s2 }
  0x52   :  { %p2802_p10 = por %p2801_p9, %p2800_p8 }
  0x54   :  { %p2803_p11 = pnand %p2802_p10, %p2796_p7 }
  0x56   :  { %2806 = shalt.err (!%p2803_p11)
}
  0x57   :  { %80 = dma.hbm_to_vmem [thread:$0]  %s3079_s5, 4096, %s75_s22, [#allocation9], %s2869_s0, %s2869_s0, %s2870_s26  }
  0x58   :  { %s2807_s14 = scalar_lea.hbm %s3081_s7, 4096 }
  0x59   :  { %p2808_p12 = scmp.ne.s32.totalorder %s3081_s7, %s2807_s14  ;;  %p2811_p13 = scmp.lt.u32.totalorder %s2807_s14, %s3081_s7 }
  0x5b   :  { %p2813_p0 = pnand %p2811_p13, %p2808_p12 }
  0x5d   :  { %2816 = shalt.err (!%p2813_p0)
}
  0x5e   :  { %s2817_s21 = scalar_lea.vmem %s2981_s25, 4096  ;;  %p2822_p2 = scmp.lt.s32.totalorder %s2981_s25, %s2981_s25 }
  0x5f   :  { %p2818_p1 = scmp.ne.s32.totalorder %s2981_s25, %s2817_s21  ;;  %p2823_p3 = scmp.lt.s32.totalorder %s2817_s21, %s2817_s21 }
  0x61   :  { %p2824_p4 = por %p2823_p3, %p2822_p2 }
  0x63   :  { %p2825_p5 = pnand %p2824_p4, %p2818_p1 }
  0x65   :  { %2828 = shalt.err (!%p2825_p5)
}
  0x66   :  { %94 = dma.hbm_to_vmem [thread:$0]  %s3081_s7, 4096, %s2981_s25, [#allocation12], %s2862_s19, %s2862_s19, %s2863_s20  }
  0x67   :  { %2851 = dma.done.wait [#allocation3], 1792  }
  0x68   :  { %2852 = vsyncadd [#allocation3], 4294965504 }
  0x69   :  { %2853 = dma.done.wait [#allocation6], 11264  }
  0x6a   :  { %2854 = vsyncadd [#allocation6], 4294956032 }
  0x6b   :  { %2855 = dma.done.wait [#allocation9], 8192  }
  0x6c   :  { %2856 = vsyncadd [#allocation9], 4294959104 }
  0x6d   :  { %2857 = dma.done.wait [#allocation12], 4096  }
  0x6e   :  { %2858 = vsyncadd [#allocation12], 4294963200  ;;  %v2481_v0 = vld [vmem:[#allocation5 + $0x40] sm:$0xff]   ;;  %v2485_v4 = vld [vmem:[#allocation5 + $0x48] sm:$0xff]   ;;  %v2873_v43 = vmov 0.0   ;;  %vm2874_vm0 = vmmov 0  }
  0x6f   :  { %v2482_v1 = vld [vmem:[#allocation5 + $0xc0] sm:$0xff]   ;;  %2282 = vmatprep.subr.bf16.mxu0 %v2481_v0  ;;  %v2486_v5 = vld [vmem:[#allocation5 + $0xc8] sm:$0xff]   ;;  %v2489_v8 = vld [vmem:[#allocation5 + $0x50] sm:$0xff]   ;;  %s2876_s25 = smov [#allocation13]  }
  0x70   :  { %v2483_v2 = vld [vmem:[#allocation5] sm:$0xff]   ;;  %2304 = vmatprep.subr.bf16.mxu1 %v2482_v1  ;;  %v2487_v6 = vld [vmem:[#allocation5 + $0x8] sm:$0xff]   ;;  %v2490_v9 = vld [vmem:[#allocation5 + $0xd0] sm:$0xff]   ;;  %s2073_s4 = sshll.u32 %s2876_s25, 4  ;;  %s2074_s4 = int_to_ptr.vmem [resolvable:$true] %s2073_s4 }
  0x71   :  { %v2484_v3 = vld [vmem:[#allocation5 + $0x80] sm:$0xff]   ;;  %2283 = vmatpush3.bf16.msra.mxu0 %v2483_v2  ;;  %v2488_v7 = vld [vmem:[#allocation5 + $0x88] sm:$0xff]   ;;  %v2491_v10 = vld [vmem:[#allocation5 + $0x10] sm:$0xff]   ;;  %p2834_p7 = scmp.lt.s32.totalorder %s2074_s4, %s2074_s4 }
  0x72   :  { %2305 = vmatpush3.bf16.msra.mxu1 %v2484_v3  ;;  %2284 = vmatprep.subr.bf16.mxu0 %v2485_v4  ;;  %v2492_v11 = vld [vmem:[#allocation5 + $0x90] sm:$0xff]   ;;  %v2493_v12 = vld [vmem:[#allocation5 + $0x58] sm:$0xff]   ;;  %v2497_v16 = vld [vmem:[#allocation5 + $0x60] sm:$0xff]  }
  0x73   :  { %2306 = vmatprep.subr.bf16.mxu1 %v2486_v5  ;;  %v2494_v13 = vld [vmem:[#allocation5 + $0xd8] sm:$0xff]   ;;  %v2498_v17 = vld [vmem:[#allocation5 + $0xe0] sm:$0xff]   ;;  %v2501_v20 = vld [vmem:[#allocation5 + $0x68] sm:$0xff]  }
  0x74   :  { %v2495_v14 = vld [vmem:[#allocation5 + $0x18] sm:$0xff]   ;;  %v2499_v18 = vld [vmem:[#allocation5 + $0x20] sm:$0xff]   ;;  %v2502_v21 = vld [vmem:[#allocation5 + $0xe8] sm:$0xff]  }
  0x75   :  { %2285 = vmatpush3.bf16.msra.mxu0 %v2487_v6  ;;  %v2496_v15 = vld [vmem:[#allocation5 + $0x98] sm:$0xff]   ;;  %v2500_v19 = vld [vmem:[#allocation5 + $0xa0] sm:$0xff]   ;;  %v2503_v22 = vld [vmem:[#allocation5 + $0x28] sm:$0xff]  }
  0x76   :  { %2307 = vmatpush3.bf16.msra.mxu1 %v2488_v7  ;;  %2286 = vmatprep.subr.bf16.mxu0 %v2489_v8  ;;  %v2504_v23 = vld [vmem:[#allocation5 + $0xa8] sm:$0xff]   ;;  %v2505_v24 = vld [vmem:[#allocation5 + $0x70] sm:$0xff]   ;;  %v2509_v28 = vld [vmem:[#allocation5 + $0x78] sm:$0xff]  }
  0x77   :  { %2308 = vmatprep.subr.bf16.mxu1 %v2490_v9  ;;  %v2506_v25 = vld [vmem:[#allocation5 + $0xf0] sm:$0xff]   ;;  %v2510_v29 = vld [vmem:[#allocation5 + $0xf8] sm:$0xff]   ;;  %v119_v34 = vld [vmem:[#allocation2 + $0x18] sm:$0xff] }
  0x78   :  { %v2507_v26 = vld [vmem:[#allocation5 + $0x30] sm:$0xff]   ;;  %v2511_v30 = vld [vmem:[#allocation5 + $0x38] sm:$0xff]   ;;  %v126_v36 = vld [vmem:[#allocation2 + $0x50] sm:$0xff] }
  0x79   :  { %2287 = vmatpush3.bf16.msra.mxu0 %v2491_v10  ;;  %v2508_v27 = vld [vmem:[#allocation5 + $0xb0] sm:$0xff]   ;;  %v2512_v31 = vld [vmem:[#allocation5 + $0xb8] sm:$0xff]   ;;  %v123_v38 = vld [vmem:[#allocation2 + $0x38] sm:$0xff]  ;;  %v133_v39 = vpack.c.bf16 %v126_v36, %v119_v34 }
  0x7a   :  { %2309 = vmatpush3.bf16.msra.mxu1 %v2492_v11  ;;  %2288 = vmatprep.subr.bf16.mxu0 %v2493_v12  ;;  %v117_v32 = vld [vmem:[#allocation2 + $0x8] sm:$0xff]  ;;  %v124_v33 = vld [vmem:[#allocation2 + $0x40] sm:$0xff]  ;;  %v118_v41 = vld [vmem:[#allocation2 + $0x10] sm:$0xff] }
  0x7b   :  { %2310 = vmatprep.subr.bf16.mxu1 %v2494_v13  ;;  %v131_v35 = vpack.c.bf16 %v124_v33, %v117_v32  ;;  %v116_v37 = vld [vmem:[#allocation2] sm:$0xff]  ;;  %v125_v42 = vld [vmem:[#allocation2 + $0x48] sm:$0xff]  ;;  %v2513_v45 = vld [vmem:[#allocation5 + $0x140] sm:$0xff]   ;;  %658 = vmatprep.mubr.bf16.mxu1 %v133_v39 }
  0x7c   :  { %v130_v40 = vpack.c.bf16 %v123_v38, %v116_v37  ;;  %v132_v44 = vpack.c.bf16 %v125_v42, %v118_v41  ;;  %v2514_v46 = vld [vmem:[#allocation5 + $0x100] sm:$0xff]   ;;  %v2516_v48 = vld [vmem:[#allocation5 + $0x148] sm:$0xff]   ;;  %v2519_v51 = vld [vmem:[#allocation5 + $0x150] sm:$0xff]  }
  0x7d   :  { %2289 = vmatpush3.bf16.msra.mxu0 %v2495_v14  ;;  %617 = vmatprep.mubr.bf16.mxu0 %v131_v35  ;;  %v2515_v47 = vld [vmem:[#allocation5 + $0x180] sm:$0xff]   ;;  %v2517_v49 = vld [vmem:[#allocation5 + $0x108] sm:$0xff]   ;;  %v2520_v52 = vld [vmem:[#allocation5 + $0x110] sm:$0xff]  }
  0x7e   :  { %2311 = vmatpush3.bf16.msra.mxu1 %v2496_v15  ;;  %2290 = vmatprep.subr.bf16.mxu0 %v2497_v16  ;;  %v2518_v50 = vld [vmem:[#allocation5 + $0x188] sm:$0xff]   ;;  %v2521_v53 = vld [vmem:[#allocation5 + $0x190] sm:$0xff]   ;;  %v2522_v54 = vld [vmem:[#allocation5 + $0x158] sm:$0xff]  }
  0x7f   :  { %2312 = vmatprep.subr.bf16.mxu1 %v2498_v17  ;;  %v2523_v55 = vld [vmem:[#allocation5 + $0x118] sm:$0xff]   ;;  %v2525_v57 = vld [vmem:[#allocation5 + $0x160] sm:$0xff]   ;;  %v2528_v60 = vld [vmem:[#allocation5 + $0x168] sm:$0xff]  }
  0x80   :  { %v2524_v56 = vld [vmem:[#allocation5 + $0x198] sm:$0xff]   ;;  %v2526_v58 = vld [vmem:[#allocation5 + $0x120] sm:$0xff]   ;;  %v2529_v61 = vld [vmem:[#allocation5 + $0x128] sm:$0xff]  }
  0x81   :  { %2291 = vmatpush3.bf16.msra.mxu0 %v2499_v18  ;;  %v2527_v59 = vld [vmem:[#allocation5 + $0x1a0] sm:$0xff]   ;;  %v2530_v62 = vld [vmem:[#allocation5 + $0x1a8] sm:$0xff]   ;;  %v2531_v63 = vld [vmem:[#allocation5 + $0x170] sm:$0xff]  }
  0x82   :  { %2313 = vmatpush3.bf16.msra.mxu1 %v2500_v19  ;;  %2292 = vmatprep.subr.bf16.mxu0 %v2501_v20  ;;  %v2532_v0 = vld [vmem:[#allocation5 + $0x130] sm:$0xff]   ;;  %v121_v1 = vld [vmem:[#allocation2 + $0x28] sm:$0xff]  ;;  %v127_v8 = vld [vmem:[#allocation2 + $0x58] sm:$0xff] }
  0x83   :  { %2314 = vmatprep.subr.bf16.mxu1 %v2502_v21  ;;  %v128_v2 = vld [vmem:[#allocation2 + $0x60] sm:$0xff]  ;;  %v2534_v4 = vld [vmem:[#allocation5 + $0x178] sm:$0xff]   ;;  %v122_v10 = vld [vmem:[#allocation2 + $0x30] sm:$0xff] }
  0x84   :  { %v2533_v3 = vld [vmem:[#allocation5 + $0x1b0] sm:$0xff]   ;;  %v135_v5 = vpack.c.bf16 %v128_v2, %v121_v1  ;;  %v2535_v6 = vld [vmem:[#allocation5 + $0x138] sm:$0xff]  }
  0x85   :  { %2293 = vmatpush3.bf16.msra.mxu0 %v2503_v22  ;;  %v120_v7 = vld [vmem:[#allocation2 + $0x20] sm:$0xff]  ;;  %v2536_v9 = vld [vmem:[#allocation5 + $0x1b8] sm:$0xff]  }
  0x86   :  { %2315 = vmatpush3.bf16.msra.mxu1 %v2504_v23  ;;  %2294 = vmatprep.subr.bf16.mxu0 %v2505_v24  ;;  %v129_v11 = vld [vmem:[#allocation2 + $0x68] sm:$0xff]  ;;  %v134_v12 = vpack.c.bf16 %v127_v8, %v120_v7  ;;  %v2537_v14 = vld [vmem:[#allocation7] ss:$16 sps:$4 sm:$0xff]   ;;  %v2539_v15 = vld [vmem:[#allocation7 + $0x4] ss:$16 sps:$4 sm:$0xff]  }
  0x87   :  { %2316 = vmatprep.subr.bf16.mxu1 %v2506_v25  ;;  %v136_v13 = vpack.c.bf16 %v129_v11, %v122_v10  ;;  %v2540_v16 = vld [vmem:[#allocation7 + $0x8] ss:$16 sps:$4 sm:$0xff]   ;;  %v2542_v17 = vld [vmem:[#allocation7 + $0xc] ss:$16 sps:$4 sm:$0xff]   ;;  %v2545_v18 = vld [vmem:[#allocation7 + $0x24] ss:$16 sps:$4 sm:$0xff]  }
  0x88   :  { %v2548_v19 = vld [vmem:[#allocation7 + $0x2c] ss:$16 sps:$4 sm:$0xff]   ;;  %v2543_v20 = vld [vmem:[#allocation7 + $0x20] ss:$16 sps:$4 sm:$0xff]   ;;  %v2546_v21 = vld [vmem:[#allocation7 + $0x28] ss:$16 sps:$4 sm:$0xff]  }
  0x89   :  { %2295 = vmatpush3.bf16.msra.mxu0 %v2507_v26  ;;  %v2551_v22 = vld [vmem:[#allocation7 + $0x44] ss:$16 sps:$4 sm:$0xff]   ;;  %v2554_v23 = vld [vmem:[#allocation7 + $0x4c] ss:$16 sps:$4 sm:$0xff]   ;;  %v2549_v24 = vld [vmem:[#allocation7 + $0x40] ss:$16 sps:$4 sm:$0xff]  }
  0x8a   :  { %2317 = vmatpush3.bf16.msra.mxu1 %v2508_v27  ;;  %2296 = vmatprep.subr.bf16.mxu0 %v2509_v28  ;;  %v2552_v25 = vld [vmem:[#allocation7 + $0x48] ss:$16 sps:$4 sm:$0xff]   ;;  %v2557_v26 = vld [vmem:[#allocation7 + $0x64] ss:$16 sps:$4 sm:$0xff]   ;;  %v2560_v27 = vld [vmem:[#allocation7 + $0x6c] ss:$16 sps:$4 sm:$0xff]  }
  0x8b   :  { %2318 = vmatprep.subr.bf16.mxu1 %v2510_v29  ;;  %v2555_v28 = vld [vmem:[#allocation7 + $0x60] ss:$16 sps:$4 sm:$0xff]   ;;  %v2558_v29 = vld [vmem:[#allocation7 + $0x68] ss:$16 sps:$4 sm:$0xff]   ;;  %v2569_v34 = vld [vmem:[#allocation7 + $0xa4] ss:$16 sps:$4 sm:$0xff]  }
  0x8c   :  { %v2561_v32 = vld [vmem:[#allocation7 + $0x80] ss:$16 sps:$4 sm:$0xff]   ;;  %v2564_v33 = vld [vmem:[#allocation7 + $0x88] ss:$16 sps:$4 sm:$0xff]   ;;  %v2572_v35 = vld [vmem:[#allocation7 + $0xac] ss:$16 sps:$4 sm:$0xff]  }
  0x8d   :  { %2297 = vmatpush3.bf16.msra.mxu0 %v2511_v30  ;;  %v2563_v30 = vld [vmem:[#allocation7 + $0x84] ss:$16 sps:$4 sm:$0xff]   ;;  %v2567_v36 = vld [vmem:[#allocation7 + $0xa0] ss:$16 sps:$4 sm:$0xff]   ;;  %v2570_v37 = vld [vmem:[#allocation7 + $0xa8] ss:$16 sps:$4 sm:$0xff]  }
  0x8e   :  { %2319 = vmatpush3.bf16.msra.mxu1 %v2512_v31  ;;  %2326 = vmatprep.subr.bf16.mxu0 %v2513_v45  ;;  %v2566_v31 = vld [vmem:[#allocation7 + $0x8c] ss:$16 sps:$4 sm:$0xff]   ;;  %v2575_v38 = vld [vmem:[#allocation7 + $0xc4] ss:$16 sps:$4 sm:$0xff]   ;;  %v2576_v41 = vld [vmem:[#allocation7 + $0xc8] ss:$16 sps:$4 sm:$0xff]  }
  0x8f   :  { %2445 = vmatprep.subr.bf16.mxu1 %v2873_v43  ;;  %v2578_v39 = vld [vmem:[#allocation7 + $0xcc] ss:$16 sps:$4 sm:$0xff]   ;;  %v2581_v42 = vld [vmem:[#allocation7 + $0xe4] ss:$16 sps:$4 sm:$0xff]   ;;  %v2582_v45 = vld [vmem:[#allocation7 + $0xe8] ss:$16 sps:$4 sm:$0xff]  }
  0x90   :  { %618 = vmatmul.mubr.bf16.vlgmr.msra.gmra.mrb[0].mxu0 %v130_v40  ;;  %v2573_v40 = vld [vmem:[#allocation7 + $0xc0] ss:$16 sps:$4 sm:$0xff]  }
  0x91   :  { %659 = vmatmul.mubr.bf16.vlgmr.msra.gmra.mrb[0].mxu1 %v132_v44  ;;  %2327 = vmatpush3.bf16.msra.mxu0 %v2514_v46  ;;  %v2579_v44 = vld [vmem:[#allocation7 + $0xe0] ss:$16 sps:$4 sm:$0xff]   ;;  %v2875_v46 = vmov 0  }
  0x92   :  { %2461 = vmatprep.mubr.msk.bf16.mxu1 %vm2874_vm0, %v2873_v43  ;;  %2446 = vmatpush3.bf16.msra.mxu1 %v2515_v47  ;;  %v2585_v47 = vld [vmem:[#allocation8 + $0x40] sm:$0xff]  }
  0x93   :  { %2328 = vmatprep.subr.bf16.mxu0 %v2516_v48  ;;  %2447 = vmatprep.subr.bf16.mxu1 %v2873_v43  ;;  %v2586_v48 = vld [vmem:[#allocation8 + $0xc0] sm:$0xff]  }
  0x94   :  { %699 = vmatprep.mubr.bf16.mxu0 %v135_v5 }
  0x95   :  { %2329 = vmatpush3.bf16.msra.mxu0 %v2517_v49 }
  0x96   :  { %2448 = vmatpush3.bf16.msra.mxu1 %v2518_v50  ;;  %2330 = vmatprep.subr.bf16.mxu0 %v2519_v51 }
  0x97   :  { %2449 = vmatprep.subr.bf16.mxu1 %v2873_v43 }
  0x99   :  { %2331 = vmatpush3.bf16.msra.mxu0 %v2520_v52 }
  0x9a   :  { %2450 = vmatpush3.bf16.msra.mxu1 %v2521_v53  ;;  %2332 = vmatprep.subr.bf16.mxu0 %v2522_v54 }
  0x9b   :  { %2451 = vmatprep.subr.bf16.mxu1 %v2873_v43 }
  0x9d   :  { %2333 = vmatpush3.bf16.msra.mxu0 %v2523_v55 }
  0x9e   :  { %2452 = vmatpush3.bf16.msra.mxu1 %v2524_v56  ;;  %2334 = vmatprep.subr.bf16.mxu0 %v2525_v57 }
  0x9f   :  { %2453 = vmatprep.subr.bf16.mxu1 %v2873_v43 }
  0xa1   :  { %2335 = vmatpush3.bf16.msra.mxu0 %v2526_v58 }
  0xa2   :  { %2454 = vmatpush3.bf16.msra.mxu1 %v2527_v59  ;;  %2336 = vmatprep.subr.bf16.mxu0 %v2528_v60 }
  0xa3   :  { %2455 = vmatprep.subr.bf16.mxu1 %v2873_v43 }
  0xa5   :  { %2337 = vmatpush3.bf16.msra.mxu0 %v2529_v61 }
  0xa6   :  { %2456 = vmatpush3.bf16.msra.mxu1 %v2530_v62  ;;  %2338 = vmatprep.subr.bf16.mxu0 %v2531_v63 }
  0xa7   :  { %2457 = vmatprep.subr.bf16.mxu1 %v2873_v43 }
  0xa9   :  { %2339 = vmatpush3.bf16.msra.mxu0 %v2532_v0 }
  0xaa   :  { %2458 = vmatpush3.bf16.msra.mxu1 %v2533_v3  ;;  %2340 = vmatprep.subr.bf16.mxu0 %v2534_v4 }
  0xab   :  { %2459 = vmatprep.subr.bf16.mxu1 %v2873_v43  ;;  %v2584_v43 = vld [vmem:[#allocation7 + $0xec] ss:$16 sps:$4 sm:$0xff]  }
  0xad   :  { %2341 = vmatpush3.bf16.msra.mxu0 %v2535_v6 }
  0xae   :  { %2460 = vmatpush3.bf16.msra.mxu1 %v2536_v9  ;;  %964 = vmatprep.subr.bf16.mxu0 %v2539_v15 }
  0xaf   :  { %1007 = vmatprep.subr.bf16.mxu1 %v2542_v17  ;;  %v2590_v17 = vld [vmem:[#allocation8 + $0xc8] sm:$0xff]  }
  0xb0   :  { %700 = vmatmul.mubr.bf16.vlgmr.msra.gmra.mrb[4].mxu0 %v134_v12 }
  0xb1   :  { %2462 = vmatmul.mubr.bf16.vlgmr.msra.gmra.mrb[4].mxu1 %v136_v13  ;;  %965 = vmatpush1.bf16.msra.mxu0 %v2537_v14  ;;  %v2587_v13 = vld [vmem:[#allocation8] sm:$0xff]  }
  0xb2   :  { %1008 = vmatpush1.bf16.msra.mxu1 %v2540_v16  ;;  %966 = vmatprep.subr.bf16.mxu0 %v2545_v18  ;;  %v2588_v14 = vld [vmem:[#allocation8 + $0x80] sm:$0xff]   ;;  %v2589_v16 = vld [vmem:[#allocation8 + $0x48] sm:$0xff]  }
  0xb3   :  { %1009 = vmatprep.subr.bf16.mxu1 %v2548_v19  ;;  %996 = vmatprep.mubr.bf16.mxu0 %v2875_v46  ;;  %v2591_v18 = vld [vmem:[#allocation8 + $0x8] sm:$0xff]  }
  0xb4   :  { %1039 = vmatprep.mubr.bf16.mxu1 %v2875_v46  ;;  %v2592_v19 = vld [vmem:[#allocation8 + $0x88] sm:$0xff]  }
  0xb5   :  { %967 = vmatpush1.bf16.msra.mxu0 %v2543_v20  ;;  %v2593_v20 = vld [vmem:[#allocation8 + $0x50] sm:$0xff]  }
  0xb6   :  { %1010 = vmatpush1.bf16.msra.mxu1 %v2546_v21  ;;  %968 = vmatprep.subr.bf16.mxu0 %v2551_v22  ;;  %v2594_v21 = vld [vmem:[#allocation8 + $0xd0] sm:$0xff]  }
  0xb7   :  { %1011 = vmatprep.subr.bf16.mxu1 %v2554_v23  ;;  %v2595_v22 = vld [vmem:[#allocation8 + $0x10] sm:$0xff]  }
  0xb8   :  { %v2596_v23 = vld [vmem:[#allocation8 + $0x90] sm:$0xff]  }
  0xb9   :  { %969 = vmatpush1.bf16.msra.mxu0 %v2549_v24  ;;  %v2597_v24 = vld [vmem:[#allocation8 + $0x58] sm:$0xff]  }
  0xba   :  { %1012 = vmatpush1.bf16.msra.mxu1 %v2552_v25  ;;  %970 = vmatprep.subr.bf16.mxu0 %v2557_v26  ;;  %v2598_v25 = vld [vmem:[#allocation8 + $0xd8] sm:$0xff]  }
  0xbb   :  { %1013 = vmatprep.subr.bf16.mxu1 %v2560_v27  ;;  %v2599_v26 = vld [vmem:[#allocation8 + $0x18] sm:$0xff]  }
  0xbc   :  { %v2600_v27 = vld [vmem:[#allocation8 + $0x98] sm:$0xff]  }
  0xbd   :  { %971 = vmatpush1.bf16.msra.mxu0 %v2555_v28  ;;  %v2601_v28 = vld [vmem:[#allocation8 + $0x60] sm:$0xff]  }
  0xbe   :  { %1014 = vmatpush1.bf16.msra.mxu1 %v2558_v29  ;;  %972 = vmatprep.subr.bf16.mxu0 %v2563_v30  ;;  %v2602_v29 = vld [vmem:[#allocation8 + $0xe0] sm:$0xff]  }
  0xbf   :  { %1015 = vmatprep.subr.bf16.mxu1 %v2566_v31  ;;  %v2603_v30 = vld [vmem:[#allocation8 + $0x20] sm:$0xff]  }
  0xc0   :  { %v2604_v31 = vld [vmem:[#allocation8 + $0xa0] sm:$0xff]  }
  0xc1   :  { %973 = vmatpush1.bf16.msra.mxu0 %v2561_v32  ;;  %v2605_v32 = vld [vmem:[#allocation8 + $0x68] sm:$0xff]  }
  0xc2   :  { %1016 = vmatpush1.bf16.msra.mxu1 %v2564_v33  ;;  %974 = vmatprep.subr.bf16.mxu0 %v2569_v34  ;;  %v2606_v33 = vld [vmem:[#allocation8 + $0xe8] sm:$0xff]  }
  0xc3   :  { %1017 = vmatprep.subr.bf16.mxu1 %v2572_v35  ;;  %v2607_v34 = vld [vmem:[#allocation8 + $0x28] sm:$0xff]  }
  0xc4   :  { %v2608_v35 = vld [vmem:[#allocation8 + $0xa8] sm:$0xff]  }
  0xc5   :  { %975 = vmatpush1.bf16.msra.mxu0 %v2567_v36  ;;  %v2609_v36 = vld [vmem:[#allocation8 + $0x70] sm:$0xff]  }
  0xc6   :  { %1018 = vmatpush1.bf16.msra.mxu1 %v2570_v37  ;;  %976 = vmatprep.subr.bf16.mxu0 %v2575_v38  ;;  %v2610_v37 = vld [vmem:[#allocation8 + $0xf0] sm:$0xff]  }
  0xc7   :  { %1019 = vmatprep.subr.bf16.mxu1 %v2578_v39  ;;  %v2611_v38 = vld [vmem:[#allocation8 + $0x30] sm:$0xff]  }
  0xc8   :  { %v2612_v39 = vld [vmem:[#allocation8 + $0xb0] sm:$0xff]  }
  0xc9   :  { %977 = vmatpush1.bf16.msra.mxu0 %v2573_v40  ;;  %v2613_v40 = vld [vmem:[#allocation8 + $0x78] sm:$0xff]  }
  0xca   :  { %1020 = vmatpush1.bf16.msra.mxu1 %v2576_v41  ;;  %978 = vmatprep.subr.bf16.mxu0 %v2581_v42  ;;  %v2614_v41 = vld [vmem:[#allocation8 + $0xf8] sm:$0xff]  }
  0xcb   :  { %1021 = vmatprep.subr.bf16.mxu1 %v2584_v43  ;;  %v2615_v42 = vld [vmem:[#allocation8 + $0x38] sm:$0xff]  }
  0xcc   :  { %v2616_v43 = vld [vmem:[#allocation8 + $0xb8] sm:$0xff]  }
  0xcd   :  { %979 = vmatpush1.bf16.msra.mxu0 %v2579_v44  ;;  %v2619_v44 = vld [vmem:[#allocation10 + $0x4] ss:$16 sps:$4 sm:$0xff]  }
  0xce   :  { %1022 = vmatpush1.bf16.msra.mxu1 %v2582_v45  ;;  %2357 = vmatprep.subr.bf16.mxu0 %v2585_v47  ;;  %v2622_v45 = vld [vmem:[#allocation10 + $0xc] ss:$16 sps:$4 sm:$0xff]   ;;  %v784_v47 = vlaneseq }
  0xcf   :  { %2379 = vmatprep.subr.bf16.mxu1 %v2586_v48 }
  0xd0   :  { %v3026_v48 = vshrl.u32 %v784_v47, 7  ;;  %v2656_v47 = vld [vmem:[#allocation10 + $0xc8] ss:$16 sps:$4 sm:$0xff]  }
 0x163   :  { %v2298_v49 = vpop.f32.mrb[0].mxu0 }
 0x164   :  { %v2320_v50 = vpop.f32.mrb[0].mxu1  ;;  %v2299_v51 = vpop.f32.mrb[1].mxu0 }
 0x165   :  { %v2300_v52 = vadd.f32 %v2299_v51, %v2298_v49  ;;  %v2321_v53 = vpop.f32.mrb[1].mxu1  ;;  %v2301_v54 = vpop.f32.mrb[2].mxu0  ;;  %v786_v49 = vsub.s32 0, %v3026_v48  ;;  %v782_v51 = vld [vmem:[%s3077_s3] sm:$0xf] }
 0x166   :  { %v2322_v55 = vadd.f32 %v2321_v53, %v2320_v50  ;;  %v2323_v56 = vpop.f32.mrb[2].mxu1  ;;  %v2302_v57 = vpop.f32.mrb[3].mxu0  ;;  %v794_v50 = vsub.s32 2, %v3026_v48  ;;  %v798_v53 = vsub.s32 3, %v3026_v48 }
 0x167   :  { %v2303_v58 = vadd.f32 %v2302_v57, %v2301_v54  ;;  %v2324_v59 = vpop.f32.mrb[3].mxu1  ;;  %v787_v54 = vrot.slane %v782_v51, %v786_v49 }
 0x168   :  { %v661_v60 = vadd.f32 %v2322_v55, %v2300_v52  ;;  %v2325_v61 = vadd.f32 %v2324_v59, %v2323_v56  ;;  %v790_v52 = vsub.s32 1, %v3026_v48  ;;  %v795_v55 = vrot.slane %v782_v51, %v794_v50 }
 0x169   :  { %v799_v57 = vrot.slane %v782_v51, %v798_v53 }
 0x16a   :  { %v664_v62 = vadd.f32 %v2325_v61, %v2303_v58  ;;  %v791_v56 = vrot.slane %v782_v51, %v790_v52  ;;  %v2661_v51 = vld [vmem:[#allocation10 + $0xe4] ss:$16 sps:$4 sm:$0xff]  }
 0x183   :  { %v2342_v63 = vpop.f32.mrb[4].mxu0 }
 0x184   :  { %v2343_v0 = vpop.f32.mrb[5].mxu0  ;;  %v742_v1 = vpop.f32.mrb[4].mxu1 }
 0x185   :  { %v2344_v2 = vadd.f32 %v2343_v0, %v2342_v63  ;;  %v2345_v3 = vpop.f32.mrb[6].mxu0  ;;  %v2463_v4 = vpop.f32.mrb[5].mxu1 }
 0x186   :  { %v2346_v5 = vpop.f32.mrb[7].mxu0  ;;  %v745_v6 = vpop.f32.mrb[6].mxu1 }
 0x187   :  { %v702_v7 = vadd.f32 %v2344_v2, %v661_v60  ;;  %v2347_v8 = vadd.f32 %v2346_v5, %v2345_v3  ;;  %v2464_v9 = vpop.f32.mrb[7].mxu1 }
 0x189   :  { %v743_v10 = vadd.f32 %v742_v1, %v702_v7  ;;  %v705_v11 = vadd.f32 %v2347_v8, %v664_v62 }
 0x18b   :  { %v746_v12 = vadd.f32 %v745_v6, %v705_v11 }
 0x18d   :  { %v749_v15 = vpack.c.bf16 %v746_v12, %v743_v10 }
 0x18f   :  { %997 = vmatmul.mubr.bf16.vlgmr.msra.gmra.mrb[8].mxu0 %v749_v15  ;;  %1040 = vmatmul.mubr.bf16.vlgmr.msra.gmra.mrb[8].mxu1 %v749_v15 }
 0x190   :  { %2358 = vmatpush3.bf16.msra.mxu0 %v2587_v13  ;;  %2380 = vmatpush3.bf16.msra.mxu1 %v2588_v14 }
 0x191   :  { %2359 = vmatprep.subr.bf16.mxu0 %v2589_v16  ;;  %2381 = vmatprep.subr.bf16.mxu1 %v2590_v17 }
 0x194   :  { %2360 = vmatpush3.bf16.msra.mxu0 %v2591_v18  ;;  %2382 = vmatpush3.bf16.msra.mxu1 %v2592_v19 }
 0x195   :  { %2361 = vmatprep.subr.bf16.mxu0 %v2593_v20  ;;  %2383 = vmatprep.subr.bf16.mxu1 %v2594_v21 }
 0x198   :  { %2362 = vmatpush3.bf16.msra.mxu0 %v2595_v22  ;;  %2384 = vmatpush3.bf16.msra.mxu1 %v2596_v23  ;;  %v2617_v22 = vld [vmem:[#allocation10] ss:$16 sps:$4 sm:$0xff]   ;;  %v2620_v23 = vld [vmem:[#allocation10 + $0x8] ss:$16 sps:$4 sm:$0xff]  }
 0x199   :  { %2363 = vmatprep.subr.bf16.mxu0 %v2597_v24  ;;  %2385 = vmatprep.subr.bf16.mxu1 %v2598_v25  ;;  %v2625_v24 = vld [vmem:[#allocation10 + $0x24] ss:$16 sps:$4 sm:$0xff]   ;;  %v2628_v25 = vld [vmem:[#allocation10 + $0x2c] ss:$16 sps:$4 sm:$0xff]  }
 0x19c   :  { %2364 = vmatpush3.bf16.msra.mxu0 %v2599_v26  ;;  %2386 = vmatpush3.bf16.msra.mxu1 %v2600_v27  ;;  %v2623_v26 = vld [vmem:[#allocation10 + $0x20] ss:$16 sps:$4 sm:$0xff]   ;;  %v2626_v27 = vld [vmem:[#allocation10 + $0x28] ss:$16 sps:$4 sm:$0xff]  }
 0x19d   :  { %2365 = vmatprep.subr.bf16.mxu0 %v2601_v28  ;;  %2387 = vmatprep.subr.bf16.mxu1 %v2602_v29  ;;  %v2631_v28 = vld [vmem:[#allocation10 + $0x44] ss:$16 sps:$4 sm:$0xff]   ;;  %v2634_v29 = vld [vmem:[#allocation10 + $0x4c] ss:$16 sps:$4 sm:$0xff]  }
 0x1a0   :  { %2366 = vmatpush3.bf16.msra.mxu0 %v2603_v30  ;;  %2388 = vmatpush3.bf16.msra.mxu1 %v2604_v31  ;;  %v2629_v30 = vld [vmem:[#allocation10 + $0x40] ss:$16 sps:$4 sm:$0xff]   ;;  %v2632_v31 = vld [vmem:[#allocation10 + $0x48] ss:$16 sps:$4 sm:$0xff]  }
 0x1a1   :  { %2367 = vmatprep.subr.bf16.mxu0 %v2605_v32  ;;  %2389 = vmatprep.subr.bf16.mxu1 %v2606_v33  ;;  %v2637_v32 = vld [vmem:[#allocation10 + $0x64] ss:$16 sps:$4 sm:$0xff]   ;;  %v2640_v33 = vld [vmem:[#allocation10 + $0x6c] ss:$16 sps:$4 sm:$0xff]  }
 0x1a4   :  { %2368 = vmatpush3.bf16.msra.mxu0 %v2607_v34  ;;  %2390 = vmatpush3.bf16.msra.mxu1 %v2608_v35  ;;  %v2635_v34 = vld [vmem:[#allocation10 + $0x60] ss:$16 sps:$4 sm:$0xff]   ;;  %v2638_v35 = vld [vmem:[#allocation10 + $0x68] ss:$16 sps:$4 sm:$0xff]  }
 0x1a5   :  { %2369 = vmatprep.subr.bf16.mxu0 %v2609_v36  ;;  %2391 = vmatprep.subr.bf16.mxu1 %v2610_v37  ;;  %v2643_v36 = vld [vmem:[#allocation10 + $0x84] ss:$16 sps:$4 sm:$0xff]   ;;  %v2646_v37 = vld [vmem:[#allocation10 + $0x8c] ss:$16 sps:$4 sm:$0xff]  }
 0x1a8   :  { %2370 = vmatpush3.bf16.msra.mxu0 %v2611_v38  ;;  %2392 = vmatpush3.bf16.msra.mxu1 %v2612_v39  ;;  %v2641_v38 = vld [vmem:[#allocation10 + $0x80] ss:$16 sps:$4 sm:$0xff]   ;;  %v2649_v39 = vld [vmem:[#allocation10 + $0xa4] ss:$16 sps:$4 sm:$0xff]  }
 0x1a9   :  { %2371 = vmatprep.subr.bf16.mxu0 %v2613_v40  ;;  %2393 = vmatprep.subr.bf16.mxu1 %v2614_v41  ;;  %v2652_v40 = vld [vmem:[#allocation10 + $0xac] ss:$16 sps:$4 sm:$0xff]   ;;  %v2647_v41 = vld [vmem:[#allocation10 + $0xa0] ss:$16 sps:$4 sm:$0xff]  }
 0x1ac   :  { %2372 = vmatpush3.bf16.msra.mxu0 %v2615_v42  ;;  %2394 = vmatpush3.bf16.msra.mxu1 %v2616_v43  ;;  %v2650_v42 = vld [vmem:[#allocation10 + $0xa8] ss:$16 sps:$4 sm:$0xff]   ;;  %v2655_v43 = vld [vmem:[#allocation10 + $0xc4] ss:$16 sps:$4 sm:$0xff]  }
 0x1ad   :  { %1615 = vmatprep.subr.bf16.mxu0 %v2619_v44  ;;  %1658 = vmatprep.subr.bf16.mxu1 %v2622_v45  ;;  %v2658_v44 = vld [vmem:[#allocation10 + $0xcc] ss:$16 sps:$4 sm:$0xff]   ;;  %v2653_v45 = vld [vmem:[#allocation10 + $0xc0] ss:$16 sps:$4 sm:$0xff]  }
 0x262   :  { %v998_v58 = vpop.f32.mrb[8].mxu0  ;;  %v1041_v59 = vpop.f32.mrb[8].mxu1 }
 0x263   :  { %v999_v60 = vadd.f32 %v998_v58, %v787_v54  ;;  %v1042_v61 = vadd.f32 %v1041_v59, %v795_v55  ;;  %v1000_v62 = vpop.f32.mrb[9].mxu0  ;;  %v1043_v63 = vpop.f32.mrb[9].mxu1  ;;  %v2666_v58 = vld [vmem:[#allocation11 + $0xc0] sm:$0xff]  }
 0x264   :  { %v1001_v0 = vadd.f32 %v1000_v62, %v791_v56  ;;  %v1044_v1 = vadd.f32 %v1043_v63, %v799_v57  ;;  %v1002_v2 = vpop.f32.mrb[10].mxu0  ;;  %v1045_v3 = vpop.f32.mrb[10].mxu1 }
 0x265   :  { %v1003_v4 = vadd.f32 %v1002_v2, %v787_v54  ;;  %v1046_v5 = vadd.f32 %v1045_v3, %v795_v55  ;;  %v1004_v6 = vpop.f32.mrb[11].mxu0  ;;  %v1047_v7 = vpop.f32.mrb[11].mxu1  ;;  %v1050_v10 = vmax.f32 %v999_v60, 0.0  ;;  %v1052_v11 = vmax.f32 %v1042_v61, 0.0  ;;  %v2664_v54 = vld [vmem:[#allocation10 + $0xec] ss:$16 sps:$4 sm:$0xff]  }
 0x266   :  { %v1005_v8 = vadd.f32 %v1004_v6, %v791_v56  ;;  %v1048_v9 = vadd.f32 %v1047_v7, %v799_v57  ;;  %v1051_v14 = vmax.f32 %v1001_v0, 0.0  ;;  %v1053_v15 = vmax.f32 %v1044_v1, 0.0  ;;  %v2659_v55 = vld [vmem:[#allocation10 + $0xe0] ss:$16 sps:$4 sm:$0xff]   ;;  %v2662_v56 = vld [vmem:[#allocation10 + $0xe8] ss:$16 sps:$4 sm:$0xff]  }
 0x267   :  { %v1054_v12 = vmax.f32 %v1003_v4, 0.0  ;;  %v1056_v13 = vmax.f32 %v1046_v5, 0.0  ;;  %v2665_v57 = vld [vmem:[#allocation11 + $0x40] sm:$0xff]  }
 0x268   :  { %v1055_v16 = vmax.f32 %v1005_v8, 0.0  ;;  %v1057_v17 = vmax.f32 %v1048_v9, 0.0  ;;  %v2667_v9 = vld [vmem:[#allocation11] sm:$0xff]  }
 0x269   :  { %v1058_v18 = vpack.c.bf16 %v1054_v12, %v1050_v10  ;;  %v1060_v19 = vpack.c.bf16 %v1056_v13, %v1052_v11  ;;  %v2668_v10 = vld [vmem:[#allocation11 + $0x80] sm:$0xff]   ;;  %v2669_v12 = vld [vmem:[#allocation11 + $0x48] sm:$0xff]  }
 0x26a   :  { %v1059_v20 = vpack.c.bf16 %v1055_v16, %v1051_v14  ;;  %v1061_v21 = vpack.c.bf16 %v1057_v17, %v1053_v15  ;;  %v2670_v13 = vld [vmem:[#allocation11 + $0xc8] sm:$0xff]   ;;  %v2673_v16 = vld [vmem:[#allocation11 + $0x50] sm:$0xff]  }
 0x26b   :  { %v2671_v14 = vld [vmem:[#allocation11 + $0x8] sm:$0xff]   ;;  %v2674_v17 = vld [vmem:[#allocation11 + $0xd0] sm:$0xff]  }
 0x26c   :  { %1350 = vmatprep.mubr.bf16.mxu0 %v1059_v20  ;;  %1391 = vmatprep.mubr.bf16.mxu1 %v1061_v21  ;;  %v2672_v15 = vld [vmem:[#allocation11 + $0x88] sm:$0xff]   ;;  %v2677_v20 = vld [vmem:[#allocation11 + $0x58] sm:$0xff]  }
 0x26d   :  { %1351 = vmatmul.mubr.bf16.vlgmr.msra.gmra.mrb[12].mxu0 %v1058_v18  ;;  %1392 = vmatmul.mubr.bf16.vlgmr.msra.gmra.mrb[12].mxu1 %v1060_v19  ;;  %v2675_v18 = vld [vmem:[#allocation11 + $0x10] sm:$0xff]   ;;  %v2678_v21 = vld [vmem:[#allocation11 + $0xd8] sm:$0xff]  }
 0x26e   :  { %1616 = vmatpush1.bf16.msra.mxu0 %v2617_v22  ;;  %1659 = vmatpush1.bf16.msra.mxu1 %v2620_v23  ;;  %v2676_v19 = vld [vmem:[#allocation11 + $0x90] sm:$0xff]   ;;  %v2679_v22 = vld [vmem:[#allocation11 + $0x18] sm:$0xff]  }
 0x26f   :  { %1617 = vmatprep.subr.bf16.mxu0 %v2625_v24  ;;  %1660 = vmatprep.subr.bf16.mxu1 %v2628_v25  ;;  %v2680_v23 = vld [vmem:[#allocation11 + $0x98] sm:$0xff]   ;;  %v2681_v24 = vld [vmem:[#allocation11 + $0x60] sm:$0xff]  }
 0x270   :  { %1647 = vmatprep.mubr.bf16.mxu0 %v2875_v46  ;;  %1690 = vmatprep.mubr.bf16.mxu1 %v2875_v46  ;;  %v2644_v46 = vld [vmem:[#allocation10 + $0x88] ss:$16 sps:$4 sm:$0xff]   ;;  %v2682_v25 = vld [vmem:[#allocation11 + $0xe0] sm:$0xff]  }
 0x272   :  { %1618 = vmatpush1.bf16.msra.mxu0 %v2623_v26  ;;  %1661 = vmatpush1.bf16.msra.mxu1 %v2626_v27  ;;  %v2683_v26 = vld [vmem:[#allocation11 + $0x20] sm:$0xff]  }
 0x273   :  { %1619 = vmatprep.subr.bf16.mxu0 %v2631_v28  ;;  %1662 = vmatprep.subr.bf16.mxu1 %v2634_v29  ;;  %v2684_v27 = vld [vmem:[#allocation11 + $0xa0] sm:$0xff]   ;;  %v2685_v28 = vld [vmem:[#allocation11 + $0x68] sm:$0xff]  }
 0x274   :  { %v2686_v29 = vld [vmem:[#allocation11 + $0xe8] sm:$0xff]  }
 0x276   :  { %1620 = vmatpush1.bf16.msra.mxu0 %v2629_v30  ;;  %1663 = vmatpush1.bf16.msra.mxu1 %v2632_v31  ;;  %v2687_v30 = vld [vmem:[#allocation11 + $0x28] sm:$0xff]  }
 0x277   :  { %1621 = vmatprep.subr.bf16.mxu0 %v2637_v32  ;;  %1664 = vmatprep.subr.bf16.mxu1 %v2640_v33  ;;  %v2688_v31 = vld [vmem:[#allocation11 + $0xa8] sm:$0xff]   ;;  %v2689_v32 = vld [vmem:[#allocation11 + $0x70] sm:$0xff]  }
 0x278   :  { %v2690_v33 = vld [vmem:[#allocation11 + $0xf0] sm:$0xff]  }
 0x27a   :  { %1622 = vmatpush1.bf16.msra.mxu0 %v2635_v34  ;;  %1665 = vmatpush1.bf16.msra.mxu1 %v2638_v35  ;;  %v2691_v34 = vld [vmem:[#allocation11 + $0x30] sm:$0xff]  }
 0x27b   :  { %1623 = vmatprep.subr.bf16.mxu0 %v2643_v36  ;;  %1666 = vmatprep.subr.bf16.mxu1 %v2646_v37  ;;  %v2692_v35 = vld [vmem:[#allocation11 + $0xb0] sm:$0xff]   ;;  %v2693_v36 = vld [vmem:[#allocation11 + $0x78] sm:$0xff]  }
 0x27c   :  { %v2694_v37 = vld [vmem:[#allocation11 + $0xf8] sm:$0xff]  }
 0x27e   :  { %1624 = vmatpush1.bf16.msra.mxu0 %v2641_v38  ;;  %1667 = vmatpush1.bf16.msra.mxu1 %v2644_v46  ;;  %v2695_v38 = vld [vmem:[#allocation11 + $0x38] sm:$0xff]  }
 0x27f   :  { %1625 = vmatprep.subr.bf16.mxu0 %v2649_v39  ;;  %1668 = vmatprep.subr.bf16.mxu1 %v2652_v40  ;;  %v2696_v46 = vld [vmem:[#allocation11 + $0xb8] sm:$0xff]   ;;  %v1433_v39 = vld [vmem:[%s3080_s6] sm:$0xf] }
 0x280   :  { %v1438_v40 = vrot.slane %v1433_v39, %v786_v49 }
 0x282   :  { %1626 = vmatpush1.bf16.msra.mxu0 %v2647_v41  ;;  %1669 = vmatpush1.bf16.msra.mxu1 %v2650_v42  ;;  %v1446_v41 = vrot.slane %v1433_v39, %v794_v50  ;;  %v1442_v42 = vrot.slane %v1433_v39, %v790_v52 }
 0x283   :  { %1627 = vmatprep.subr.bf16.mxu0 %v2655_v43  ;;  %1670 = vmatprep.subr.bf16.mxu1 %v2658_v44  ;;  %v1450_v43 = vrot.slane %v1433_v39, %v798_v53 }
 0x286   :  { %1628 = vmatpush1.bf16.msra.mxu0 %v2653_v45  ;;  %1671 = vmatpush1.bf16.msra.mxu1 %v2656_v47 }
 0x287   :  { %1629 = vmatprep.subr.bf16.mxu0 %v2661_v51  ;;  %1672 = vmatprep.subr.bf16.mxu1 %v2664_v54 }
 0x28a   :  { %1630 = vmatpush1.bf16.msra.mxu0 %v2659_v55  ;;  %1673 = vmatpush1.bf16.msra.mxu1 %v2662_v56 }
 0x28b   :  { %2401 = vmatprep.subr.bf16.mxu0 %v2665_v57  ;;  %2423 = vmatprep.subr.bf16.mxu1 %v2666_v58 }
 0x340   :  { %v2373_v59 = vpop.f32.mrb[12].mxu0  ;;  %v2395_v60 = vpop.f32.mrb[12].mxu1 }
 0x341   :  { %v2374_v61 = vpop.f32.mrb[13].mxu0  ;;  %v2396_v62 = vpop.f32.mrb[13].mxu1 }
 0x342   :  { %v2375_v63 = vadd.f32 %v2374_v61, %v2373_v59  ;;  %v2397_v0 = vadd.f32 %v2396_v62, %v2395_v60  ;;  %v2376_v1 = vpop.f32.mrb[14].mxu0  ;;  %v2398_v2 = vpop.f32.mrb[14].mxu1 }
 0x343   :  { %v2377_v3 = vpop.f32.mrb[15].mxu0  ;;  %v2399_v4 = vpop.f32.mrb[15].mxu1 }
 0x344   :  { %v1394_v5 = vadd.f32 %v2397_v0, %v2375_v63  ;;  %v2378_v6 = vadd.f32 %v2377_v3, %v2376_v1  ;;  %v2400_v7 = vadd.f32 %v2399_v4, %v2398_v2 }
 0x346   :  { %v1397_v8 = vadd.f32 %v2400_v7, %v2378_v6 }
 0x348   :  { %v1400_v11 = vpack.c.bf16 %v1397_v8, %v1394_v5 }
 0x34a   :  { %1648 = vmatmul.mubr.bf16.vlgmr.msra.gmra.mrb[16].mxu0 %v1400_v11  ;;  %1691 = vmatmul.mubr.bf16.vlgmr.msra.gmra.mrb[16].mxu1 %v1400_v11  ;;  %v2240_v11 = vld [vmem:[%s3082_s8] ss:$0 sm:$0xff]  ;;  %s2829_s8 = scalar_lea.vmem %s2074_s4, 128 }
 0x34b   :  { %2402 = vmatpush3.bf16.msra.mxu0 %v2667_v9  ;;  %2424 = vmatpush3.bf16.msra.mxu1 %v2668_v10  ;;  %p2830_p6 = scmp.ne.s32.totalorder %s2074_s4, %s2829_s8  ;;  %p2835_p8 = scmp.lt.s32.totalorder %s2829_s8, %s2829_s8 }
 0x34c   :  { %2403 = vmatprep.subr.bf16.mxu0 %v2669_v12  ;;  %2425 = vmatprep.subr.bf16.mxu1 %v2670_v13 }
 0x34d   :  { %p2836_p9 = por %p2835_p8, %p2834_p7 }
 0x34f   :  { %2404 = vmatpush3.bf16.msra.mxu0 %v2671_v14  ;;  %2426 = vmatpush3.bf16.msra.mxu1 %v2672_v15  ;;  %p2837_p10 = pnand %p2836_p9, %p2830_p6 }
 0x350   :  { %2405 = vmatprep.subr.bf16.mxu0 %v2673_v16  ;;  %2427 = vmatprep.subr.bf16.mxu1 %v2674_v17 }
 0x353   :  { %2406 = vmatpush3.bf16.msra.mxu0 %v2675_v18  ;;  %2428 = vmatpush3.bf16.msra.mxu1 %v2676_v19 }
 0x354   :  { %2407 = vmatprep.subr.bf16.mxu0 %v2677_v20  ;;  %2429 = vmatprep.subr.bf16.mxu1 %v2678_v21 }
 0x357   :  { %2408 = vmatpush3.bf16.msra.mxu0 %v2679_v22  ;;  %2430 = vmatpush3.bf16.msra.mxu1 %v2680_v23 }
 0x358   :  { %2409 = vmatprep.subr.bf16.mxu0 %v2681_v24  ;;  %2431 = vmatprep.subr.bf16.mxu1 %v2682_v25 }
 0x35b   :  { %2410 = vmatpush3.bf16.msra.mxu0 %v2683_v26  ;;  %2432 = vmatpush3.bf16.msra.mxu1 %v2684_v27 }
 0x35c   :  { %2411 = vmatprep.subr.bf16.mxu0 %v2685_v28  ;;  %2433 = vmatprep.subr.bf16.mxu1 %v2686_v29 }
 0x35f   :  { %2412 = vmatpush3.bf16.msra.mxu0 %v2687_v30  ;;  %2434 = vmatpush3.bf16.msra.mxu1 %v2688_v31 }
 0x360   :  { %2413 = vmatprep.subr.bf16.mxu0 %v2689_v32  ;;  %2435 = vmatprep.subr.bf16.mxu1 %v2690_v33 }
 0x363   :  { %2414 = vmatpush3.bf16.msra.mxu0 %v2691_v34  ;;  %2436 = vmatpush3.bf16.msra.mxu1 %v2692_v35 }
 0x364   :  { %2415 = vmatprep.subr.bf16.mxu0 %v2693_v36  ;;  %2437 = vmatprep.subr.bf16.mxu1 %v2694_v37 }
 0x367   :  { %2416 = vmatpush3.bf16.msra.mxu0 %v2695_v38  ;;  %2438 = vmatpush3.bf16.msra.mxu1 %v2696_v46 }
 0x41d   :  { %v1649_v44 = vpop.f32.mrb[16].mxu0  ;;  %v1692_v45 = vpop.f32.mrb[16].mxu1 }
 0x41e   :  { %v1650_v47 = vadd.f32 %v1649_v44, %v1438_v40  ;;  %v1693_v51 = vadd.f32 %v1692_v45, %v1446_v41  ;;  %v1651_v54 = vpop.f32.mrb[17].mxu0  ;;  %v1694_v55 = vpop.f32.mrb[17].mxu1 }
 0x41f   :  { %v1652_v56 = vadd.f32 %v1651_v54, %v1442_v42  ;;  %v1695_v57 = vadd.f32 %v1694_v55, %v1450_v43  ;;  %v1653_v58 = vpop.f32.mrb[18].mxu0  ;;  %v1696_v59 = vpop.f32.mrb[18].mxu1 }
 0x420   :  { %v1654_v49 = vadd.f32 %v1653_v58, %v1438_v40  ;;  %v1697_v60 = vadd.f32 %v1696_v59, %v1446_v41  ;;  %v1655_v61 = vpop.f32.mrb[19].mxu0  ;;  %v1698_v50 = vpop.f32.mrb[19].mxu1  ;;  %v1701_v52 = vmax.f32 %v1650_v47, 0.0  ;;  %v1703_v0 = vmax.f32 %v1693_v51, 0.0 }
 0x421   :  { %v1656_v62 = vadd.f32 %v1655_v61, %v1442_v42  ;;  %v1699_v63 = vadd.f32 %v1698_v50, %v1450_v43  ;;  %v1702_v1 = vmax.f32 %v1652_v56, 0.0  ;;  %v1704_v2 = vmax.f32 %v1695_v57, 0.0 }
 0x422   :  { %v1705_v48 = vmax.f32 %v1654_v49, 0.0  ;;  %v1707_v53 = vmax.f32 %v1697_v60, 0.0 }
 0x423   :  { %v1706_v3 = vmax.f32 %v1656_v62, 0.0  ;;  %v1708_v4 = vmax.f32 %v1699_v63, 0.0 }
 0x424   :  { %v1709_v5 = vpack.c.bf16 %v1705_v48, %v1701_v52  ;;  %v1711_v6 = vpack.c.bf16 %v1707_v53, %v1703_v0 }
 0x425   :  { %v1710_v7 = vpack.c.bf16 %v1706_v3, %v1702_v1  ;;  %v1712_v8 = vpack.c.bf16 %v1708_v4, %v1704_v2 }
 0x427   :  { %2008 = vmatprep.mubr.bf16.mxu0 %v1710_v7  ;;  %2049 = vmatprep.mubr.bf16.mxu1 %v1712_v8 }
 0x428   :  { %2009 = vmatmul.mubr.bf16.vlgmr.msra.gmra.mrb[20].mxu0 %v1709_v5  ;;  %2050 = vmatmul.mubr.bf16.vlgmr.msra.gmra.mrb[20].mxu1 %v1711_v6 }
 0x4fb   :  { %v2417_v9 = vpop.f32.mrb[20].mxu0  ;;  %v2439_v10 = vpop.f32.mrb[20].mxu1 }
 0x4fc   :  { %v2418_v12 = vpop.f32.mrb[21].mxu0  ;;  %v2440_v13 = vpop.f32.mrb[21].mxu1 }
 0x4fd   :  { %v2419_v14 = vadd.f32 %v2418_v12, %v2417_v9  ;;  %v2441_v15 = vadd.f32 %v2440_v13, %v2439_v10  ;;  %v2420_v16 = vpop.f32.mrb[22].mxu0  ;;  %v2442_v17 = vpop.f32.mrb[22].mxu1 }
 0x4fe   :  { %v2421_v18 = vpop.f32.mrb[23].mxu0  ;;  %v2443_v19 = vpop.f32.mrb[23].mxu1 }
 0x4ff   :  { %v2011_v20 = vadd.f32 %v2419_v14, %v2240_v11  ;;  %v2422_v21 = vadd.f32 %v2421_v18, %v2420_v16  ;;  %v2444_v22 = vadd.f32 %v2443_v19, %v2442_v17 }
 0x501   :  { %v2052_v23 = vadd.f32 %v2441_v15, %v2011_v20  ;;  %v2014_v24 = vadd.f32 %v2422_v21, %v2240_v11 }
 0x503   :  { %v2055_v25 = vadd.f32 %v2444_v22, %v2014_v24 }
 0x505   :  { %v2280_v26 = vpack.c.bf16 %v2055_v25, %v2052_v23 }
 0x507   :  { %2281 = vst [vmem:[#allocation13] sm:$0xff] %v2280_v26  }
 0x508   :  { %2840 = shalt.err (!%p2837_p10)
}
 0x509   :  { %s2841_s28 = scalar_lea.hbm %s3083_s9, 128 }
 0x50a   :  { %p2842_p11 = scmp.ne.s32.totalorder %s3083_s9, %s2841_s28  ;;  %p2845_p12 = scmp.lt.u32.totalorder %s2841_s28, %s3083_s9 }
 0x50c   :  { %p2847_p13 = pnand %p2845_p12, %p2842_p11 }
 0x50e   :  { %2850 = shalt.err (!%p2847_p13)
}
 0x50f   :  { %2079 = dma.vmem_to_hbm [thread:$0]  %s2074_s4, 128, %s3083_s9, [#allocation4], %s2862_s19, %s2862_s19, %s2863_s20  }
 0x510   :  { %2859 = dma.done.wait [#allocation4], 128  }
 0x511   :  { %2860 = vsyncadd [#allocation4], 4294967168 }
 0x512   :  { %2083 = vsyncpa [#allocation3], 1 }
 0x513   :  { %2084 = vsyncpa [#allocation6], 1 }
 0x514   :  { %2085 = vsyncpa [#allocation9], 1 }
 0x515   :  { %2086 = vsyncpa [#allocation12], 1 }
 0x516   :  { %2087 = vsyncpa [#allocation4], 1 }

// kernel: tpu_custom_call.1
= control target key start
LH: loop header
LB: loop body
LE: loop exit
PB: predicated region body
PF: predicated region fallthrough
CT: control target
= control target key end

     0   :  { %14 = vsyncpa [#allocation3], 0  ;;  %s3074_s0 = inlined_call_operand.hbm [shape: f32[16,896], index: 0, kind: input, shape index: {}]   ;;  %s3075_s1 = inlined_call_operand.hbm [shape: bf16[896,128], index: 1, kind: input, shape index: {}]   ;;  %s3076_s2 = inlined_call_operand.hbm [shape: bf16[128,512], index: 2, kind: input, shape index: {}]   ;;  %s3077_s3 = inlined_call_operand.vmem [shape: f32[1,512], index: 3, kind: input, shape index: {}]   ;;  %s3078_s4 = inlined_call_operand.hbm [shape: bf16[512,128], index: 4, kind: input, shape index: {}]   ;;  %s3079_s5 = inlined_call_operand.hbm [shape: bf16[128,512], index: 5, kind: input, shape index: {}]   ;;  %s3080_s6 = inlined_call_operand.vmem [shape: f32[1,512], index: 6, kind: input, shape index: {}]   ;;  %s3081_s7 = inlined_call_operand.hbm [shape: bf16[512,128], index: 7, kind: input, shape index: {}]   ;;  %s3082_s8 = inlined_call_operand.vmem [shape: f32[1,128], index: 8, kind: input, shape index: {}]   ;;  %s3083_s9 = inlined_call_operand.hbm [shape: bf16[16,128], index: 9, kind: output, shape index: {}]  }
   0x1   :  { %15 = vsyncpa [#allocation6], 0 }
   0x2   :  { %16 = vsyncpa [#allocation9], 0 }
   0x3   :  { %17 = vsyncpa [#allocation12], 0 }
   0x4   :  { %18 = vsyncpa [#allocation4], 0  ;;  %s2861_s30 = smov [#allocation5]   ;;  %s2697_s13 = scalar_lea.hbm %s3075_s1, 7168 }
   0x5   :  { %s36_s10 = sshll.u32 %s2861_s30, 4  ;;  %p2698_p0 = scmp.ne.s32.totalorder %s3075_s1, %s2697_s13  ;;  %s37_s10 = int_to_ptr.vmem [resolvable:$true] %s36_s10 }
   0x6   :  { %p2701_p1 = scmp.lt.u32.totalorder %s2697_s13, %s3075_s1 }
   0x8   :  { %p2703_p2 = pnand %p2701_p1, %p2698_p0 }
   0xa   :  { %2706 = shalt.err (!%p2703_p2)
}
   0xb   :  { %s2707_s18 = scalar_lea.vmem %s37_s10, 7168  ;;  %p2712_p4 = scmp.lt.s32.totalorder %s37_s10, %s37_s10 }
   0xc   :  { %p2708_p3 = scmp.ne.s32.totalorder %s37_s10, %s2707_s18  ;;  %p2713_p5 = scmp.lt.s32.totalorder %s2707_s18, %s2707_s18 }
   0xe   :  { %p2714_p6 = por %p2713_p5, %p2712_p4 }
  0x10   :  { %p2715_p7 = pnand %p2714_p6, %p2708_p3 }
  0x12   :  { %2718 = shalt.err (!%p2715_p7)
}
  0x13   :  { %s2862_s19 = smov 64   ;;  %s2863_s20 = smov 4  }
  0x14   :  { %42 = dma.hbm_to_vmem [thread:$0]  %s3075_s1, 7168, %s37_s10, [#allocation6], %s2862_s19, %s2862_s19, %s2863_s20  }
  0x15   :  { %s2864_s23 = smov [#allocation8]   ;;  %s2865_s25 = smov [#allocation2]  }
  0x16   :  { %s62_s24 = sshll.u32 %s2864_s23, 4  ;;  %s24_s26 = sshll.u32 %s2865_s25, 4  ;;  %s63_s24 = int_to_ptr.vmem [resolvable:$true] %s62_s24  ;;  %s25_s26 = int_to_ptr.vmem [resolvable:$true] %s24_s26 }
  0x17   :  { %s2719_s29 = scalar_lea.hbm %s3078_s4, 4096 }
  0x18   :  { %p2720_p8 = scmp.ne.s32.totalorder %s3078_s4, %s2719_s29  ;;  %p2723_p9 = scmp.lt.u32.totalorder %s2719_s29, %s3078_s4 }
  0x1a   :  { %p2725_p10 = pnand %p2723_p9, %p2720_p8 }
  0x1c   :  { %2728 = shalt.err (!%p2725_p10)
}
  0x1d   :  { %s2729_s1 = scalar_lea.vmem %s63_s24, 4096  ;;  %p2734_p12 = scmp.lt.s32.totalorder %s63_s24, %s63_s24 }
  0x1e   :  { %p2730_p11 = scmp.ne.s32.totalorder %s63_s24, %s2729_s1  ;;  %p2735_p13 = scmp.lt.s32.totalorder %s2729_s1, %s2729_s1 }
  0x20   :  { %p2736_p0 = por %p2735_p13, %p2734_p12 }
  0x22   :  { %p2737_p1 = pnand %p2736_p0, %p2730_p11 }
  0x24   :  { %2740 = shalt.err (!%p2737_p1)
}
  0x25   :  { %68 = dma.hbm_to_vmem [thread:$0]  %s3078_s4, 4096, %s63_s24, [#allocation9], %s2862_s19, %s2862_s19, %s2863_s20  }
  0x26   :  { %s2741_s17 = scalar_lea.hbm %s3074_s0, 1792 }
  0x27   :  { %p2742_p2 = scmp.ne.s32.totalorder %s3074_s0, %s2741_s17  ;;  %p2745_p3 = scmp.lt.u32.totalorder %s2741_s17, %s3074_s0 }
  0x29   :  { %p2747_p4 = pnand %p2745_p3, %p2742_p2 }
  0x2b   :  { %2750 = shalt.err (!%p2747_p4)
}
  0x2c   :  { %s2751_s25 = scalar_lea.vmem %s25_s26, 1792  ;;  %p2756_p6 = scmp.lt.s32.totalorder %s25_s26, %s25_s26 }
  0x2d   :  { %p2752_p5 = scmp.ne.s32.totalorder %s25_s26, %s2751_s25  ;;  %p2757_p7 = scmp.lt.s32.totalorder %s2751_s25, %s2751_s25 }
  0x2f   :  { %p2758_p8 = por %p2757_p7, %p2756_p6 }
  0x31   :  { %p2759_p9 = pnand %p2758_p8, %p2752_p5 }
  0x33   :  { %2762 = shalt.err (!%p2759_p9)
}
  0x34   :  { %s2866_s4 = smov 896   ;;  %s2867_s24 = smov 56  }
  0x35   :  { %30 = dma.hbm_to_vmem [thread:$0]  %s3074_s0, 1792, %s25_s26, [#allocation3], %s2866_s4, %s2866_s4, %s2867_s24  }
  0x36   :  { %s2868_s29 = smov [#allocation7]   ;;  %s2763_s13 = scalar_lea.hbm %s3076_s2, 4096 }
  0x37   :  { %s48_s30 = sshll.u32 %s2868_s29, 4  ;;  %p2764_p10 = scmp.ne.s32.totalorder %s3076_s2, %s2763_s13  ;;  %s49_s30 = int_to_ptr.vmem [resolvable:$true] %s48_s30 }
  0x38   :  { %p2767_p11 = scmp.lt.u32.totalorder %s2763_s13, %s3076_s2 }
  0x3a   :  { %p2769_p12 = pnand %p2767_p11, %p2764_p10 }
  0x3c   :  { %2772 = shalt.err (!%p2769_p12)
}
  0x3d   :  { %s2773_s16 = scalar_lea.vmem %s49_s30, 4096  ;;  %p2778_p0 = scmp.lt.s32.totalorder %s49_s30, %s49_s30 }
  0x3e   :  { %p2774_p13 = scmp.ne.s32.totalorder %s49_s30, %s2773_s16  ;;  %p2779_p1 = scmp.lt.s32.totalorder %s2773_s16, %s2773_s16 }
  0x40   :  { %p2780_p2 = por %p2779_p1, %p2778_p0 }
  0x42   :  { %p2781_p3 = pnand %p2780_p2, %p2774_p13 }
  0x44   :  { %2784 = shalt.err (!%p2781_p3)
}
  0x45   :  { %s2869_s0 = smov 256   ;;  %s2870_s26 = smov 16  }
  0x46   :  { %54 = dma.hbm_to_vmem [thread:$0]  %s3076_s2, 4096, %s49_s30, [#allocation6], %s2869_s0, %s2869_s0, %s2870_s26  }
  0x47   :  { %s2871_s21 = smov [#allocation10]   ;;  %s2872_s23 = smov [#allocation11]  }
  0x48   :  { %s74_s22 = sshll.u32 %s2871_s21, 4  ;;  %s88_s25 = sshll.u32 %s2872_s23, 4  ;;  %s75_s22 = int_to_ptr.vmem [resolvable:$true] %s74_s22  ;;  %s2981_s25 = int_to_ptr.vmem [resolvable:$true] %s88_s25 }
  0x49   :  { %s2785_s27 = scalar_lea.hbm %s3079_s5, 4096 }
  0x4a   :  { %p2786_p4 = scmp.ne.s32.totalorder %s3079_s5, %s2785_s27  ;;  %p2789_p5 = scmp.lt.u32.totalorder %s2785_s27, %s3079_s5 }
  0x4c   :  { %p2791_p6 = pnand %p2789_p5, %p2786_p4 }
  0x4e   :  { %2794 = shalt.err (!%p2791_p6)
}
  0x4f   :  { %s2795_s2 = scalar_lea.vmem %s75_s22, 4096  ;;  %p2800_p8 = scmp.lt.s32.totalorder %s75_s22, %s75_s22 }
  0x50   :  { %p2796_p7 = scmp.ne.s32.totalorder %s75_s22, %s2795_s2  ;;  %p2801_p9 = scmp.lt.s32.totalorder %s2795_s2, %s2795_s2 }
  0x52   :  { %p2802_p10 = por %p2801_p9, %p2800_p8 }
  0x54   :  { %p2803_p11 = pnand %p2802_p10, %p2796_p7 }
  0x56   :  { %2806 = shalt.err (!%p2803_p11)
}
  0x57   :  { %80 = dma.hbm_to_vmem [thread:$0]  %s3079_s5, 4096, %s75_s22, [#allocation9], %s2869_s0, %s2869_s0, %s2870_s26  }
  0x58   :  { %s2807_s14 = scalar_lea.hbm %s3081_s7, 4096 }
  0x59   :  { %p2808_p12 = scmp.ne.s32.totalorder %s3081_s7, %s2807_s14  ;;  %p2811_p13 = scmp.lt.u32.totalorder %s2807_s14, %s3081_s7 }
  0x5b   :  { %p2813_p0 = pnand %p2811_p13, %p2808_p12 }
  0x5d   :  { %2816 = shalt.err (!%p2813_p0)
}
  0x5e   :  { %s2817_s21 = scalar_lea.vmem %s2981_s25, 4096  ;;  %p2822_p2 = scmp.lt.s32.totalorder %s2981_s25, %s2981_s25 }
  0x5f   :  { %p2818_p1 = scmp.ne.s32.totalorder %s2981_s25, %s2817_s21  ;;  %p2823_p3 = scmp.lt.s32.totalorder %s2817_s21, %s2817_s21 }
  0x61   :  { %p2824_p4 = por %p2823_p3, %p2822_p2 }
  0x63   :  { %p2825_p5 = pnand %p2824_p4, %p2818_p1 }
  0x65   :  { %2828 = shalt.err (!%p2825_p5)
}
  0x66   :  { %94 = dma.hbm_to_vmem [thread:$0]  %s3081_s7, 4096, %s2981_s25, [#allocation12], %s2862_s19, %s2862_s19, %s2863_s20  }
  0x67   :  { %2851 = dma.done.wait [#allocation3], 1792  }
  0x68   :  { %2852 = vsyncadd [#allocation3], 4294965504 }
  0x69   :  { %2853 = dma.done.wait [#allocation6], 11264  }
  0x6a   :  { %2854 = vsyncadd [#allocation6], 4294956032 }
  0x6b   :  { %2855 = dma.done.wait [#allocation9], 8192  }
  0x6c   :  { %2856 = vsyncadd [#allocation9], 4294959104 }
  0x6d   :  { %2857 = dma.done.wait [#allocation12], 4096  }
  0x6e   :  { %2858 = vsyncadd [#allocation12], 4294963200  ;;  %v2481_v0 = vld [vmem:[#allocation5 + $0x40] sm:$0xff]   ;;  %v2485_v4 = vld [vmem:[#allocation5 + $0x48] sm:$0xff]   ;;  %v2873_v43 = vmov 0.0   ;;  %vm2874_vm0 = vmmov 0  }
  0x6f   :  { %v2482_v1 = vld [vmem:[#allocation5 + $0xc0] sm:$0xff]   ;;  %2282 = vmatprep.subr.bf16.mxu0 %v2481_v0  ;;  %v2486_v5 = vld [vmem:[#allocation5 + $0xc8] sm:$0xff]   ;;  %v2489_v8 = vld [vmem:[#allocation5 + $0x50] sm:$0xff]   ;;  %s2876_s25 = smov [#allocation13]  }
  0x70   :  { %v2483_v2 = vld [vmem:[#allocation5] sm:$0xff]   ;;  %2304 = vmatprep.subr.bf16.mxu1 %v2482_v1  ;;  %v2487_v6 = vld [vmem:[#allocation5 + $0x8] sm:$0xff]   ;;  %v2490_v9 = vld [vmem:[#allocation5 + $0xd0] sm:$0xff]   ;;  %s2073_s4 = sshll.u32 %s2876_s25, 4  ;;  %s2074_s4 = int_to_ptr.vmem [resolvable:$true] %s2073_s4 }
  0x71   :  { %v2484_v3 = vld [vmem:[#allocation5 + $0x80] sm:$0xff]   ;;  %2283 = vmatpush3.bf16.msra.mxu0 %v2483_v2  ;;  %v2488_v7 = vld [vmem:[#allocation5 + $0x88] sm:$0xff]   ;;  %v2491_v10 = vld [vmem:[#allocation5 + $0x10] sm:$0xff]   ;;  %p2834_p7 = scmp.lt.s32.totalorder %s2074_s4, %s2074_s4 }
  0x72   :  { %2305 = vmatpush3.bf16.msra.mxu1 %v2484_v3  ;;  %2284 = vmatprep.subr.bf16.mxu0 %v2485_v4  ;;  %v2492_v11 = vld [vmem:[#allocation5 + $0x90] sm:$0xff]   ;;  %v2493_v12 = vld [vmem:[#allocation5 + $0x58] sm:$0xff]   ;;  %v2497_v16 = vld [vmem:[#allocation5 + $0x60] sm:$0xff]  }
  0x73   :  { %2306 = vmatprep.subr.bf16.mxu1 %v2486_v5  ;;  %v2494_v13 = vld [vmem:[#allocation5 + $0xd8] sm:$0xff]   ;;  %v2498_v17 = vld [vmem:[#allocation5 + $0xe0] sm:$0xff]   ;;  %v2501_v20 = vld [vmem:[#allocation5 + $0x68] sm:$0xff]  }
  0x74   :  { %v2495_v14 = vld [vmem:[#allocation5 + $0x18] sm:$0xff]   ;;  %v2499_v18 = vld [vmem:[#allocation5 + $0x20] sm:$0xff]   ;;  %v2502_v21 = vld [vmem:[#allocation5 + $0xe8] sm:$0xff]  }
  0x75   :  { %2285 = vmatpush3.bf16.msra.mxu0 %v2487_v6  ;;  %v2496_v15 = vld [vmem:[#allocation5 + $0x98] sm:$0xff]   ;;  %v2500_v19 = vld [vmem:[#allocation5 + $0xa0] sm:$0xff]   ;;  %v2503_v22 = vld [vmem:[#allocation5 + $0x28] sm:$0xff]  }
  0x76   :  { %2307 = vmatpush3.bf16.msra.mxu1 %v2488_v7  ;;  %2286 = vmatprep.subr.bf16.mxu0 %v2489_v8  ;;  %v2504_v23 = vld [vmem:[#allocation5 + $0xa8] sm:$0xff]   ;;  %v2505_v24 = vld [vmem:[#allocation5 + $0x70] sm:$0xff]   ;;  %v2509_v28 = vld [vmem:[#allocation5 + $0x78] sm:$0xff]  }
  0x77   :  { %2308 = vmatprep.subr.bf16.mxu1 %v2490_v9  ;;  %v2506_v25 = vld [vmem:[#allocation5 + $0xf0] sm:$0xff]   ;;  %v2510_v29 = vld [vmem:[#allocation5 + $0xf8] sm:$0xff]   ;;  %v119_v34 = vld [vmem:[#allocation2 + $0x18] sm:$0xff] }
  0x78   :  { %v2507_v26 = vld [vmem:[#allocation5 + $0x30] sm:$0xff]   ;;  %v2511_v30 = vld [vmem:[#allocation5 + $0x38] sm:$0xff]   ;;  %v126_v36 = vld [vmem:[#allocation2 + $0x50] sm:$0xff] }
  0x79   :  { %2287 = vmatpush3.bf16.msra.mxu0 %v2491_v10  ;;  %v2508_v27 = vld [vmem:[#allocation5 + $0xb0] sm:$0xff]   ;;  %v2512_v31 = vld [vmem:[#allocation5 + $0xb8] sm:$0xff]   ;;  %v123_v38 = vld [vmem:[#allocation2 + $0x38] sm:$0xff]  ;;  %v133_v39 = vpack.c.bf16 %v126_v36, %v119_v34 }
  0x7a   :  { %2309 = vmatpush3.bf16.msra.mxu1 %v2492_v11  ;;  %2288 = vmatprep.subr.bf16.mxu0 %v2493_v12  ;;  %v117_v32 = vld [vmem:[#allocation2 + $0x8] sm:$0xff]  ;;  %v124_v33 = vld [vmem:[#allocation2 + $0x40] sm:$0xff]  ;;  %v118_v41 = vld [vmem:[#allocation2 + $0x10] sm:$0xff] }
  0x7b   :  { %2310 = vmatprep.subr.bf16.mxu1 %v2494_v13  ;;  %v131_v35 = vpack.c.bf16 %v124_v33, %v117_v32  ;;  %v116_v37 = vld [vmem:[#allocation2] sm:$0xff]  ;;  %v125_v42 = vld [vmem:[#allocation2 + $0x48] sm:$0xff]  ;;  %v2513_v45 = vld [vmem:[#allocation5 + $0x140] sm:$0xff]   ;;  %658 = vmatprep.mubr.bf16.mxu1 %v133_v39 }
  0x7c   :  { %v130_v40 = vpack.c.bf16 %v123_v38, %v116_v37  ;;  %v132_v44 = vpack.c.bf16 %v125_v42, %v118_v41  ;;  %v2514_v46 = vld [vmem:[#allocation5 + $0x100] sm:$0xff]   ;;  %v2516_v48 = vld [vmem:[#allocation5 + $0x148] sm:$0xff]   ;;  %v2519_v51 = vld [vmem:[#allocation5 + $0x150] sm:$0xff]  }
  0x7d   :  { %2289 = vmatpush3.bf16.msra.mxu0 %v2495_v14  ;;  %617 = vmatprep.mubr.bf16.mxu0 %v131_v35  ;;  %v2515_v47 = vld [vmem:[#allocation5 + $0x180] sm:$0xff]   ;;  %v2517_v49 = vld [vmem:[#allocation5 + $0x108] sm:$0xff]   ;;  %v2520_v52 = vld [vmem:[#allocation5 + $0x110] sm:$0xff]  }
  0x7e   :  { %2311 = vmatpush3.bf16.msra.mxu1 %v2496_v15  ;;  %2290 = vmatprep.subr.bf16.mxu0 %v2497_v16  ;;  %v2518_v50 = vld [vmem:[#allocation5 + $0x188] sm:$0xff]   ;;  %v2521_v53 = vld [vmem:[#allocation5 + $0x190] sm:$0xff]   ;;  %v2522_v54 = vld [vmem:[#allocation5 + $0x158] sm:$0xff]  }
  0x7f   :  { %2312 = vmatprep.subr.bf16.mxu1 %v2498_v17  ;;  %v2523_v55 = vld [vmem:[#allocation5 + $0x118] sm:$0xff]   ;;  %v2525_v57 = vld [vmem:[#allocation5 + $0x160] sm:$0xff]   ;;  %v2528_v60 = vld [vmem:[#allocation5 + $0x168] sm:$0xff]  }
  0x80   :  { %v2524_v56 = vld [vmem:[#allocation5 + $0x198] sm:$0xff]   ;;  %v2526_v58 = vld [vmem:[#allocation5 + $0x120] sm:$0xff]   ;;  %v2529_v61 = vld [vmem:[#allocation5 + $0x128] sm:$0xff]  }
  0x81   :  { %2291 = vmatpush3.bf16.msra.mxu0 %v2499_v18  ;;  %v2527_v59 = vld [vmem:[#allocation5 + $0x1a0] sm:$0xff]   ;;  %v2530_v62 = vld [vmem:[#allocation5 + $0x1a8] sm:$0xff]   ;;  %v2531_v63 = vld [vmem:[#allocation5 + $0x170] sm:$0xff]  }
  0x82   :  { %2313 = vmatpush3.bf16.msra.mxu1 %v2500_v19  ;;  %2292 = vmatprep.subr.bf16.mxu0 %v2501_v20  ;;  %v2532_v0 = vld [vmem:[#allocation5 + $0x130] sm:$0xff]   ;;  %v121_v1 = vld [vmem:[#allocation2 + $0x28] sm:$0xff]  ;;  %v127_v8 = vld [vmem:[#allocation2 + $0x58] sm:$0xff] }
  0x83   :  { %2314 = vmatprep.subr.bf16.mxu1 %v2502_v21  ;;  %v128_v2 = vld [vmem:[#allocation2 + $0x60] sm:$0xff]  ;;  %v2534_v4 = vld [vmem:[#allocation5 + $0x178] sm:$0xff]   ;;  %v122_v10 = vld [vmem:[#allocation2 + $0x30] sm:$0xff] }
  0x84   :  { %v2533_v3 = vld [vmem:[#allocation5 + $0x1b0] sm:$0xff]   ;;  %v135_v5 = vpack.c.bf16 %v128_v2, %v121_v1  ;;  %v2535_v6 = vld [vmem:[#allocation5 + $0x138] sm:$0xff]  }
  0x85   :  { %2293 = vmatpush3.bf16.msra.mxu0 %v2503_v22  ;;  %v120_v7 = vld [vmem:[#allocation2 + $0x20] sm:$0xff]  ;;  %v2536_v9 = vld [vmem:[#allocation5 + $0x1b8] sm:$0xff]  }
  0x86   :  { %2315 = vmatpush3.bf16.msra.mxu1 %v2504_v23  ;;  %2294 = vmatprep.subr.bf16.mxu0 %v2505_v24  ;;  %v129_v11 = vld [vmem:[#allocation2 + $0x68] sm:$0xff]  ;;  %v134_v12 = vpack.c.bf16 %v127_v8, %v120_v7  ;;  %v2537_v14 = vld [vmem:[#allocation7] ss:$16 sps:$4 sm:$0xff]   ;;  %v2539_v15 = vld [vmem:[#allocation7 + $0x4] ss:$16 sps:$4 sm:$0xff]  }
  0x87   :  { %2316 = vmatprep.subr.bf16.mxu1 %v2506_v25  ;;  %v136_v13 = vpack.c.bf16 %v129_v11, %v122_v10  ;;  %v2540_v16 = vld [vmem:[#allocation7 + $0x8] ss:$16 sps:$4 sm:$0xff]   ;;  %v2542_v17 = vld [vmem:[#allocation7 + $0xc] ss:$16 sps:$4 sm:$0xff]   ;;  %v2545_v18 = vld [vmem:[#allocation7 + $0x24] ss:$16 sps:$4 sm:$0xff]  }
  0x88   :  { %v2548_v19 = vld [vmem:[#allocation7 + $0x2c] ss:$16 sps:$4 sm:$0xff]   ;;  %v2543_v20 = vld [vmem:[#allocation7 + $0x20] ss:$16 sps:$4 sm:$0xff]   ;;  %v2546_v21 = vld [vmem:[#allocation7 + $0x28] ss:$16 sps:$4 sm:$0xff]  }
  0x89   :  { %2295 = vmatpush3.bf16.msra.mxu0 %v2507_v26  ;;  %v2551_v22 = vld [vmem:[#allocation7 + $0x44] ss:$16 sps:$4 sm:$0xff]   ;;  %v2554_v23 = vld [vmem:[#allocation7 + $0x4c] ss:$16 sps:$4 sm:$0xff]   ;;  %v2549_v24 = vld [vmem:[#allocation7 + $0x40] ss:$16 sps:$4 sm:$0xff]  }
  0x8a   :  { %2317 = vmatpush3.bf16.msra.mxu1 %v2508_v27  ;;  %2296 = vmatprep.subr.bf16.mxu0 %v2509_v28  ;;  %v2552_v25 = vld [vmem:[#allocation7 + $0x48] ss:$16 sps:$4 sm:$0xff]   ;;  %v2557_v26 = vld [vmem:[#allocation7 + $0x64] ss:$16 sps:$4 sm:$0xff]   ;;  %v2560_v27 = vld [vmem:[#allocation7 + $0x6c] ss:$16 sps:$4 sm:$0xff]  }
  0x8b   :  { %2318 = vmatprep.subr.bf16.mxu1 %v2510_v29  ;;  %v2555_v28 = vld [vmem:[#allocation7 + $0x60] ss:$16 sps:$4 sm:$0xff]   ;;  %v2558_v29 = vld [vmem:[#allocation7 + $0x68] ss:$16 sps:$4 sm:$0xff]   ;;  %v2569_v34 = vld [vmem:[#allocation7 + $0xa4] ss:$16 sps:$4 sm:$0xff]  }
  0x8c   :  { %v2561_v32 = vld [vmem:[#allocation7 + $0x80] ss:$16 sps:$4 sm:$0xff]   ;;  %v2564_v33 = vld [vmem:[#allocation7 + $0x88] ss:$16 sps:$4 sm:$0xff]   ;;  %v2572_v35 = vld [vmem:[#allocation7 + $0xac] ss:$16 sps:$4 sm:$0xff]  }
  0x8d   :  { %2297 = vmatpush3.bf16.msra.mxu0 %v2511_v30  ;;  %v2563_v30 = vld [vmem:[#allocation7 + $0x84] ss:$16 sps:$4 sm:$0xff]   ;;  %v2567_v36 = vld [vmem:[#allocation7 + $0xa0] ss:$16 sps:$4 sm:$0xff]   ;;  %v2570_v37 = vld [vmem:[#allocation7 + $0xa8] ss:$16 sps:$4 sm:$0xff]  }
  0x8e   :  { %2319 = vmatpush3.bf16.msra.mxu1 %v2512_v31  ;;  %2326 = vmatprep.subr.bf16.mxu0 %v2513_v45  ;;  %v2566_v31 = vld [vmem:[#allocation7 + $0x8c] ss:$16 sps:$4 sm:$0xff]   ;;  %v2575_v38 = vld [vmem:[#allocation7 + $0xc4] ss:$16 sps:$4 sm:$0xff]   ;;  %v2576_v41 = vld [vmem:[#allocation7 + $0xc8] ss:$16 sps:$4 sm:$0xff]  }
  0x8f   :  { %2445 = vmatprep.subr.bf16.mxu1 %v2873_v43  ;;  %v2578_v39 = vld [vmem:[#allocation7 + $0xcc] ss:$16 sps:$4 sm:$0xff]   ;;  %v2581_v42 = vld [vmem:[#allocation7 + $0xe4] ss:$16 sps:$4 sm:$0xff]   ;;  %v2582_v45 = vld [vmem:[#allocation7 + $0xe8] ss:$16 sps:$4 sm:$0xff]  }
  0x90   :  { %618 = vmatmul.mubr.bf16.vlgmr.msra.gmra.mrb[0].mxu0 %v130_v40  ;;  %v2573_v40 = vld [vmem:[#allocation7 + $0xc0] ss:$16 sps:$4 sm:$0xff]  }
  0x91   :  { %659 = vmatmul.mubr.bf16.vlgmr.msra.gmra.mrb[0].mxu1 %v132_v44  ;;  %2327 = vmatpush3.bf16.msra.mxu0 %v2514_v46  ;;  %v2579_v44 = vld [vmem:[#allocation7 + $0xe0] ss:$16 sps:$4 sm:$0xff]   ;;  %v2875_v46 = vmov 0  }
  0x92   :  { %2461 = vmatprep.mubr.msk.bf16.mxu1 %vm2874_vm0, %v2873_v43  ;;  %2446 = vmatpush3.bf16.msra.mxu1 %v2515_v47  ;;  %v2585_v47 = vld [vmem:[#allocation8 + $0x40] sm:$0xff]  }
  0x93   :  { %2328 = vmatprep.subr.bf16.mxu0 %v2516_v48  ;;  %2447 = vmatprep.subr.bf16.mxu1 %v2873_v43  ;;  %v2586_v48 = vld [vmem:[#allocation8 + $0xc0] sm:$0xff]  }
  0x94   :  { %699 = vmatprep.mubr.bf16.mxu0 %v135_v5 }
  0x95   :  { %2329 = vmatpush3.bf16.msra.mxu0 %v2517_v49 }
  0x96   :  { %2448 = vmatpush3.bf16.msra.mxu1 %v2518_v50  ;;  %2330 = vmatprep.subr.bf16.mxu0 %v2519_v51 }
  0x97   :  { %2449 = vmatprep.subr.bf16.mxu1 %v2873_v43 }
  0x99   :  { %2331 = vmatpush3.bf16.msra.mxu0 %v2520_v52 }
  0x9a   :  { %2450 = vmatpush3.bf16.msra.mxu1 %v2521_v53  ;;  %2332 = vmatprep.subr.bf16.mxu0 %v2522_v54 }
  0x9b   :  { %2451 = vmatprep.subr.bf16.mxu1 %v2873_v43 }
  0x9d   :  { %2333 = vmatpush3.bf16.msra.mxu0 %v2523_v55 }
  0x9e   :  { %2452 = vmatpush3.bf16.msra.mxu1 %v2524_v56  ;;  %2334 = vmatprep.subr.bf16.mxu0 %v2525_v57 }
  0x9f   :  { %2453 = vmatprep.subr.bf16.mxu1 %v2873_v43 }
  0xa1   :  { %2335 = vmatpush3.bf16.msra.mxu0 %v2526_v58 }
  0xa2   :  { %2454 = vmatpush3.bf16.msra.mxu1 %v2527_v59  ;;  %2336 = vmatprep.subr.bf16.mxu0 %v2528_v60 }
  0xa3   :  { %2455 = vmatprep.subr.bf16.mxu1 %v2873_v43 }
  0xa5   :  { %2337 = vmatpush3.bf16.msra.mxu0 %v2529_v61 }
  0xa6   :  { %2456 = vmatpush3.bf16.msra.mxu1 %v2530_v62  ;;  %2338 = vmatprep.subr.bf16.mxu0 %v2531_v63 }
  0xa7   :  { %2457 = vmatprep.subr.bf16.mxu1 %v2873_v43 }
  0xa9   :  { %2339 = vmatpush3.bf16.msra.mxu0 %v2532_v0 }
  0xaa   :  { %2458 = vmatpush3.bf16.msra.mxu1 %v2533_v3  ;;  %2340 = vmatprep.subr.bf16.mxu0 %v2534_v4 }
  0xab   :  { %2459 = vmatprep.subr.bf16.mxu1 %v2873_v43  ;;  %v2584_v43 = vld [vmem:[#allocation7 + $0xec] ss:$16 sps:$4 sm:$0xff]  }
  0xad   :  { %2341 = vmatpush3.bf16.msra.mxu0 %v2535_v6 }
  0xae   :  { %2460 = vmatpush3.bf16.msra.mxu1 %v2536_v9  ;;  %964 = vmatprep.subr.bf16.mxu0 %v2539_v15 }
  0xaf   :  { %1007 = vmatprep.subr.bf16.mxu1 %v2542_v17  ;;  %v2590_v17 = vld [vmem:[#allocation8 + $0xc8] sm:$0xff]  }
  0xb0   :  { %700 = vmatmul.mubr.bf16.vlgmr.msra.gmra.mrb[4].mxu0 %v134_v12 }
  0xb1   :  { %2462 = vmatmul.mubr.bf16.vlgmr.msra.gmra.mrb[4].mxu1 %v136_v13  ;;  %965 = vmatpush1.bf16.msra.mxu0 %v2537_v14  ;;  %v2587_v13 = vld [vmem:[#allocation8] sm:$0xff]  }
  0xb2   :  { %1008 = vmatpush1.bf16.msra.mxu1 %v2540_v16  ;;  %966 = vmatprep.subr.bf16.mxu0 %v2545_v18  ;;  %v2588_v14 = vld [vmem:[#allocation8 + $0x80] sm:$0xff]   ;;  %v2589_v16 = vld [vmem:[#allocation8 + $0x48] sm:$0xff]  }
  0xb3   :  { %1009 = vmatprep.subr.bf16.mxu1 %v2548_v19  ;;  %996 = vmatprep.mubr.bf16.mxu0 %v2875_v46  ;;  %v2591_v18 = vld [vmem:[#allocation8 + $0x8] sm:$0xff]  }
  0xb4   :  { %1039 = vmatprep.mubr.bf16.mxu1 %v2875_v46  ;;  %v2592_v19 = vld [vmem:[#allocation8 + $0x88] sm:$0xff]  }
  0xb5   :  { %967 = vmatpush1.bf16.msra.mxu0 %v2543_v20  ;;  %v2593_v20 = vld [vmem:[#allocation8 + $0x50] sm:$0xff]  }
  0xb6   :  { %1010 = vmatpush1.bf16.msra.mxu1 %v2546_v21  ;;  %968 = vmatprep.subr.bf16.mxu0 %v2551_v22  ;;  %v2594_v21 = vld [vmem:[#allocation8 + $0xd0] sm:$0xff]  }
  0xb7   :  { %1011 = vmatprep.subr.bf16.mxu1 %v2554_v23  ;;  %v2595_v22 = vld [vmem:[#allocation8 + $0x10] sm:$0xff]  }
  0xb8   :  { %v2596_v23 = vld [vmem:[#allocation8 + $0x90] sm:$0xff]  }
  0xb9   :  { %969 = vmatpush1.bf16.msra.mxu0 %v2549_v24  ;;  %v2597_v24 = vld [vmem:[#allocation8 + $0x58] sm:$0xff]  }
  0xba   :  { %1012 = vmatpush1.bf16.msra.mxu1 %v2552_v25  ;;  %970 = vmatprep.subr.bf16.mxu0 %v2557_v26  ;;  %v2598_v25 = vld [vmem:[#allocation8 + $0xd8] sm:$0xff]  }
  0xbb   :  { %1013 = vmatprep.subr.bf16.mxu1 %v2560_v27  ;;  %v2599_v26 = vld [vmem:[#allocation8 + $0x18] sm:$0xff]  }
  0xbc   :  { %v2600_v27 = vld [vmem:[#allocation8 + $0x98] sm:$0xff]  }
  0xbd   :  { %971 = vmatpush1.bf16.msra.mxu0 %v2555_v28  ;;  %v2601_v28 = vld [vmem:[#allocation8 + $0x60] sm:$0xff]  }
  0xbe   :  { %1014 = vmatpush1.bf16.msra.mxu1 %v2558_v29  ;;  %972 = vmatprep.subr.bf16.mxu0 %v2563_v30  ;;  %v2602_v29 = vld [vmem:[#allocation8 + $0xe0] sm:$0xff]  }
  0xbf   :  { %1015 = vmatprep.subr.bf16.mxu1 %v2566_v31  ;;  %v2603_v30 = vld [vmem:[#allocation8 + $0x20] sm:$0xff]  }
  0xc0   :  { %v2604_v31 = vld [vmem:[#allocation8 + $0xa0] sm:$0xff]  }
  0xc1   :  { %973 = vmatpush1.bf16.msra.mxu0 %v2561_v32  ;;  %v2605_v32 = vld [vmem:[#allocation8 + $0x68] sm:$0xff]  }
  0xc2   :  { %1016 = vmatpush1.bf16.msra.mxu1 %v2564_v33  ;;  %974 = vmatprep.subr.bf16.mxu0 %v2569_v34  ;;  %v2606_v33 = vld [vmem:[#allocation8 + $0xe8] sm:$0xff]  }
  0xc3   :  { %1017 = vmatprep.subr.bf16.mxu1 %v2572_v35  ;;  %v2607_v34 = vld [vmem:[#allocation8 + $0x28] sm:$0xff]  }
  0xc4   :  { %v2608_v35 = vld [vmem:[#allocation8 + $0xa8] sm:$0xff]  }
  0xc5   :  { %975 = vmatpush1.bf16.msra.mxu0 %v2567_v36  ;;  %v2609_v36 = vld [vmem:[#allocation8 + $0x70] sm:$0xff]  }
  0xc6   :  { %1018 = vmatpush1.bf16.msra.mxu1 %v2570_v37  ;;  %976 = vmatprep.subr.bf16.mxu0 %v2575_v38  ;;  %v2610_v37 = vld [vmem:[#allocation8 + $0xf0] sm:$0xff]  }
  0xc7   :  { %1019 = vmatprep.subr.bf16.mxu1 %v2578_v39  ;;  %v2611_v38 = vld [vmem:[#allocation8 + $0x30] sm:$0xff]  }
  0xc8   :  { %v2612_v39 = vld [vmem:[#allocation8 + $0xb0] sm:$0xff]  }
  0xc9   :  { %977 = vmatpush1.bf16.msra.mxu0 %v2573_v40  ;;  %v2613_v40 = vld [vmem:[#allocation8 + $0x78] sm:$0xff]  }
  0xca   :  { %1020 = vmatpush1.bf16.msra.mxu1 %v2576_v41  ;;  %978 = vmatprep.subr.bf16.mxu0 %v2581_v42  ;;  %v2614_v41 = vld [vmem:[#allocation8 + $0xf8] sm:$0xff]  }
  0xcb   :  { %1021 = vmatprep.subr.bf16.mxu1 %v2584_v43  ;;  %v2615_v42 = vld [vmem:[#allocation8 + $0x38] sm:$0xff]  }
  0xcc   :  { %v2616_v43 = vld [vmem:[#allocation8 + $0xb8] sm:$0xff]  }
  0xcd   :  { %979 = vmatpush1.bf16.msra.mxu0 %v2579_v44  ;;  %v2619_v44 = vld [vmem:[#allocation10 + $0x4] ss:$16 sps:$4 sm:$0xff]  }
  0xce   :  { %1022 = vmatpush1.bf16.msra.mxu1 %v2582_v45  ;;  %2357 = vmatprep.subr.bf16.mxu0 %v2585_v47  ;;  %v2622_v45 = vld [vmem:[#allocation10 + $0xc] ss:$16 sps:$4 sm:$0xff]   ;;  %v784_v47 = vlaneseq }
  0xcf   :  { %2379 = vmatprep.subr.bf16.mxu1 %v2586_v48 }
  0xd0   :  { %v3026_v48 = vshrl.u32 %v784_v47, 7  ;;  %v2656_v47 = vld [vmem:[#allocation10 + $0xc8] ss:$16 sps:$4 sm:$0xff]  }
 0x163   :  { %v2298_v49 = vpop.f32.mrb[0].mxu0 }
 0x164   :  { %v2320_v50 = vpop.f32.mrb[0].mxu1  ;;  %v2299_v51 = vpop.f32.mrb[1].mxu0 }
 0x165   :  { %v2300_v52 = vadd.f32 %v2299_v51, %v2298_v49  ;;  %v2321_v53 = vpop.f32.mrb[1].mxu1  ;;  %v2301_v54 = vpop.f32.mrb[2].mxu0  ;;  %v786_v49 = vsub.s32 0, %v3026_v48  ;;  %v782_v51 = vld [vmem:[%s3077_s3] sm:$0xf] }
 0x166   :  { %v2322_v55 = vadd.f32 %v2321_v53, %v2320_v50  ;;  %v2323_v56 = vpop.f32.mrb[2].mxu1  ;;  %v2302_v57 = vpop.f32.mrb[3].mxu0  ;;  %v794_v50 = vsub.s32 2, %v3026_v48  ;;  %v798_v53 = vsub.s32 3, %v3026_v48 }
 0x167   :  { %v2303_v58 = vadd.f32 %v2302_v57, %v2301_v54  ;;  %v2324_v59 = vpop.f32.mrb[3].mxu1  ;;  %v787_v54 = vrot.slane %v782_v51, %v786_v49 }
 0x168   :  { %v661_v60 = vadd.f32 %v2322_v55, %v2300_v52  ;;  %v2325_v61 = vadd.f32 %v2324_v59, %v2323_v56  ;;  %v790_v52 = vsub.s32 1, %v3026_v48  ;;  %v795_v55 = vrot.slane %v782_v51, %v794_v50 }
 0x169   :  { %v799_v57 = vrot.slane %v782_v51, %v798_v53 }
 0x16a   :  { %v664_v62 = vadd.f32 %v2325_v61, %v2303_v58  ;;  %v791_v56 = vrot.slane %v782_v51, %v790_v52  ;;  %v2661_v51 = vld [vmem:[#allocation10 + $0xe4] ss:$16 sps:$4 sm:$0xff]  }
 0x183   :  { %v2342_v63 = vpop.f32.mrb[4].mxu0 }
 0x184   :  { %v2343_v0 = vpop.f32.mrb[5].mxu0  ;;  %v742_v1 = vpop.f32.mrb[4].mxu1 }
 0x185   :  { %v2344_v2 = vadd.f32 %v2343_v0, %v2342_v63  ;;  %v2345_v3 = vpop.f32.mrb[6].mxu0  ;;  %v2463_v4 = vpop.f32.mrb[5].mxu1 }
 0x186   :  { %v2346_v5 = vpop.f32.mrb[7].mxu0  ;;  %v745_v6 = vpop.f32.mrb[6].mxu1 }
 0x187   :  { %v702_v7 = vadd.f32 %v2344_v2, %v661_v60  ;;  %v2347_v8 = vadd.f32 %v2346_v5, %v2345_v3  ;;  %v2464_v9 = vpop.f32.mrb[7].mxu1 }
 0x189   :  { %v743_v10 = vadd.f32 %v742_v1, %v702_v7  ;;  %v705_v11 = vadd.f32 %v2347_v8, %v664_v62 }
 0x18b   :  { %v746_v12 = vadd.f32 %v745_v6, %v705_v11 }
 0x18d   :  { %v749_v15 = vpack.c.bf16 %v746_v12, %v743_v10 }
 0x18f   :  { %997 = vmatmul.mubr.bf16.vlgmr.msra.gmra.mrb[8].mxu0 %v749_v15  ;;  %1040 = vmatmul.mubr.bf16.vlgmr.msra.gmra.mrb[8].mxu1 %v749_v15 }
 0x190   :  { %2358 = vmatpush3.bf16.msra.mxu0 %v2587_v13  ;;  %2380 = vmatpush3.bf16.msra.mxu1 %v2588_v14 }
 0x191   :  { %2359 = vmatprep.subr.bf16.mxu0 %v2589_v16  ;;  %2381 = vmatprep.subr.bf16.mxu1 %v2590_v17 }
 0x194   :  { %2360 = vmatpush3.bf16.msra.mxu0 %v2591_v18  ;;  %2382 = vmatpush3.bf16.msra.mxu1 %v2592_v19 }
 0x195   :  { %2361 = vmatprep.subr.bf16.mxu0 %v2593_v20  ;;  %2383 = vmatprep.subr.bf16.mxu1 %v2594_v21 }
 0x198   :  { %2362 = vmatpush3.bf16.msra.mxu0 %v2595_v22  ;;  %2384 = vmatpush3.bf16.msra.mxu1 %v2596_v23  ;;  %v2617_v22 = vld [vmem:[#allocation10] ss:$16 sps:$4 sm:$0xff]   ;;  %v2620_v23 = vld [vmem:[#allocation10 + $0x8] ss:$16 sps:$4 sm:$0xff]  }
 0x199   :  { %2363 = vmatprep.subr.bf16.mxu0 %v2597_v24  ;;  %2385 = vmatprep.subr.bf16.mxu1 %v2598_v25  ;;  %v2625_v24 = vld [vmem:[#allocation10 + $0x24] ss:$16 sps:$4 sm:$0xff]   ;;  %v2628_v25 = vld [vmem:[#allocation10 + $0x2c] ss:$16 sps:$4 sm:$0xff]  }
 0x19c   :  { %2364 = vmatpush3.bf16.msra.mxu0 %v2599_v26  ;;  %2386 = vmatpush3.bf16.msra.mxu1 %v2600_v27  ;;  %v2623_v26 = vld [vmem:[#allocation10 + $0x20] ss:$16 sps:$4 sm:$0xff]   ;;  %v2626_v27 = vld [vmem:[#allocation10 + $0x28] ss:$16 sps:$4 sm:$0xff]  }
 0x19d   :  { %2365 = vmatprep.subr.bf16.mxu0 %v2601_v28  ;;  %2387 = vmatprep.subr.bf16.mxu1 %v2602_v29  ;;  %v2631_v28 = vld [vmem:[#allocation10 + $0x44] ss:$16 sps:$4 sm:$0xff]   ;;  %v2634_v29 = vld [vmem:[#allocation10 + $0x4c] ss:$16 sps:$4 sm:$0xff]  }
 0x1a0   :  { %2366 = vmatpush3.bf16.msra.mxu0 %v2603_v30  ;;  %2388 = vmatpush3.bf16.msra.mxu1 %v2604_v31  ;;  %v2629_v30 = vld [vmem:[#allocation10 + $0x40] ss:$16 sps:$4 sm:$0xff]   ;;  %v2632_v31 = vld [vmem:[#allocation10 + $0x48] ss:$16 sps:$4 sm:$0xff]  }
 0x1a1   :  { %2367 = vmatprep.subr.bf16.mxu0 %v2605_v32  ;;  %2389 = vmatprep.subr.bf16.mxu1 %v2606_v33  ;;  %v2637_v32 = vld [vmem:[#allocation10 + $0x64] ss:$16 sps:$4 sm:$0xff]   ;;  %v2640_v33 = vld [vmem:[#allocation10 + $0x6c] ss:$16 sps:$4 sm:$0xff]  }
 0x1a4   :  { %2368 = vmatpush3.bf16.msra.mxu0 %v2607_v34  ;;  %2390 = vmatpush3.bf16.msra.mxu1 %v2608_v35  ;;  %v2635_v34 = vld [vmem:[#allocation10 + $0x60] ss:$16 sps:$4 sm:$0xff]   ;;  %v2638_v35 = vld [vmem:[#allocation10 + $0x68] ss:$16 sps:$4 sm:$0xff]  }
 0x1a5   :  { %2369 = vmatprep.subr.bf16.mxu0 %v2609_v36  ;;  %2391 = vmatprep.subr.bf16.mxu1 %v2610_v37  ;;  %v2643_v36 = vld [vmem:[#allocation10 + $0x84] ss:$16 sps:$4 sm:$0xff]   ;;  %v2646_v37 = vld [vmem:[#allocation10 + $0x8c] ss:$16 sps:$4 sm:$0xff]  }
 0x1a8   :  { %2370 = vmatpush3.bf16.msra.mxu0 %v2611_v38  ;;  %2392 = vmatpush3.bf16.msra.mxu1 %v2612_v39  ;;  %v2641_v38 = vld [vmem:[#allocation10 + $0x80] ss:$16 sps:$4 sm:$0xff]   ;;  %v2649_v39 = vld [vmem:[#allocation10 + $0xa4] ss:$16 sps:$4 sm:$0xff]  }
 0x1a9   :  { %2371 = vmatprep.subr.bf16.mxu0 %v2613_v40  ;;  %2393 = vmatprep.subr.bf16.mxu1 %v2614_v41  ;;  %v2652_v40 = vld [vmem:[#allocation10 + $0xac] ss:$16 sps:$4 sm:$0xff]   ;;  %v2647_v41 = vld [vmem:[#allocation10 + $0xa0] ss:$16 sps:$4 sm:$0xff]  }
 0x1ac   :  { %2372 = vmatpush3.bf16.msra.mxu0 %v2615_v42  ;;  %2394 = vmatpush3.bf16.msra.mxu1 %v2616_v43  ;;  %v2650_v42 = vld [vmem:[#allocation10 + $0xa8] ss:$16 sps:$4 sm:$0xff]   ;;  %v2655_v43 = vld [vmem:[#allocation10 + $0xc4] ss:$16 sps:$4 sm:$0xff]  }
 0x1ad   :  { %1615 = vmatprep.subr.bf16.mxu0 %v2619_v44  ;;  %1658 = vmatprep.subr.bf16.mxu1 %v2622_v45  ;;  %v2658_v44 = vld [vmem:[#allocation10 + $0xcc] ss:$16 sps:$4 sm:$0xff]   ;;  %v2653_v45 = vld [vmem:[#allocation10 + $0xc0] ss:$16 sps:$4 sm:$0xff]  }
 0x262   :  { %v998_v58 = vpop.f32.mrb[8].mxu0  ;;  %v1041_v59 = vpop.f32.mrb[8].mxu1 }
 0x263   :  { %v999_v60 = vadd.f32 %v998_v58, %v787_v54  ;;  %v1042_v61 = vadd.f32 %v1041_v59, %v795_v55  ;;  %v1000_v62 = vpop.f32.mrb[9].mxu0  ;;  %v1043_v63 = vpop.f32.mrb[9].mxu1  ;;  %v2666_v58 = vld [vmem:[#allocation11 + $0xc0] sm:$0xff]  }
 0x264   :  { %v1001_v0 = vadd.f32 %v1000_v62, %v791_v56  ;;  %v1044_v1 = vadd.f32 %v1043_v63, %v799_v57  ;;  %v1002_v2 = vpop.f32.mrb[10].mxu0  ;;  %v1045_v3 = vpop.f32.mrb[10].mxu1 }
 0x265   :  { %v1003_v4 = vadd.f32 %v1002_v2, %v787_v54  ;;  %v1046_v5 = vadd.f32 %v1045_v3, %v795_v55  ;;  %v1004_v6 = vpop.f32.mrb[11].mxu0  ;;  %v1047_v7 = vpop.f32.mrb[11].mxu1  ;;  %v1050_v10 = vmax.f32 %v999_v60, 0.0  ;;  %v1052_v11 = vmax.f32 %v1042_v61, 0.0  ;;  %v2664_v54 = vld [vmem:[#allocation10 + $0xec] ss:$16 sps:$4 sm:$0xff]  }
 0x266   :  { %v1005_v8 = vadd.f32 %v1004_v6, %v791_v56  ;;  %v1048_v9 = vadd.f32 %v1047_v7, %v799_v57  ;;  %v1051_v14 = vmax.f32 %v1001_v0, 0.0  ;;  %v1053_v15 = vmax.f32 %v1044_v1, 0.0  ;;  %v2659_v55 = vld [vmem:[#allocation10 + $0xe0] ss:$16 sps:$4 sm:$0xff]   ;;  %v2662_v56 = vld [vmem:[#allocation10 + $0xe8] ss:$16 sps:$4 sm:$0xff]  }
 0x267   :  { %v1054_v12 = vmax.f32 %v1003_v4, 0.0  ;;  %v1056_v13 = vmax.f32 %v1046_v5, 0.0  ;;  %v2665_v57 = vld [vmem:[#allocation11 + $0x40] sm:$0xff]  }
 0x268   :  { %v1055_v16 = vmax.f32 %v1005_v8, 0.0  ;;  %v1057_v17 = vmax.f32 %v1048_v9, 0.0  ;;  %v2667_v9 = vld [vmem:[#allocation11] sm:$0xff]  }
 0x269   :  { %v1058_v18 = vpack.c.bf16 %v1054_v12, %v1050_v10  ;;  %v1060_v19 = vpack.c.bf16 %v1056_v13, %v1052_v11  ;;  %v2668_v10 = vld [vmem:[#allocation11 + $0x80] sm:$0xff]   ;;  %v2669_v12 = vld [vmem:[#allocation11 + $0x48] sm:$0xff]  }
 0x26a   :  { %v1059_v20 = vpack.c.bf16 %v1055_v16, %v1051_v14  ;;  %v1061_v21 = vpack.c.bf16 %v1057_v17, %v1053_v15  ;;  %v2670_v13 = vld [vmem:[#allocation11 + $0xc8] sm:$0xff]   ;;  %v2673_v16 = vld [vmem:[#allocation11 + $0x50] sm:$0xff]  }
 0x26b   :  { %v2671_v14 = vld [vmem:[#allocation11 + $0x8] sm:$0xff]   ;;  %v2674_v17 = vld [vmem:[#allocation11 + $0xd0] sm:$0xff]  }
 0x26c   :  { %1350 = vmatprep.mubr.bf16.mxu0 %v1059_v20  ;;  %1391 = vmatprep.mubr.bf16.mxu1 %v1061_v21  ;;  %v2672_v15 = vld [vmem:[#allocation11 + $0x88] sm:$0xff]   ;;  %v2677_v20 = vld [vmem:[#allocation11 + $0x58] sm:$0xff]  }
 0x26d   :  { %1351 = vmatmul.mubr.bf16.vlgmr.msra.gmra.mrb[12].mxu0 %v1058_v18  ;;  %1392 = vmatmul.mubr.bf16.vlgmr.msra.gmra.mrb[12].mxu1 %v1060_v19  ;;  %v2675_v18 = vld [vmem:[#allocation11 + $0x10] sm:$0xff]   ;;  %v2678_v21 = vld [vmem:[#allocation11 + $0xd8] sm:$0xff]  }
 0x26e   :  { %1616 = vmatpush1.bf16.msra.mxu0 %v2617_v22  ;;  %1659 = vmatpush1.bf16.msra.mxu1 %v2620_v23  ;;  %v2676_v19 = vld [vmem:[#allocation11 + $0x90] sm:$0xff]   ;;  %v2679_v22 = vld [vmem:[#allocation11 + $0x18] sm:$0xff]  }
 0x26f   :  { %1617 = vmatprep.subr.bf16.mxu0 %v2625_v24  ;;  %1660 = vmatprep.subr.bf16.mxu1 %v2628_v25  ;;  %v2680_v23 = vld [vmem:[#allocation11 + $0x98] sm:$0xff]   ;;  %v2681_v24 = vld [vmem:[#allocation11 + $0x60] sm:$0xff]  }
 0x270   :  { %1647 = vmatprep.mubr.bf16.mxu0 %v2875_v46  ;;  %1690 = vmatprep.mubr.bf16.mxu1 %v2875_v46  ;;  %v2644_v46 = vld [vmem:[#allocation10 + $0x88] ss:$16 sps:$4 sm:$0xff]   ;;  %v2682_v25 = vld [vmem:[#allocation11 + $0xe0] sm:$0xff]  }
 0x272   :  { %1618 = vmatpush1.bf16.msra.mxu0 %v2623_v26  ;;  %1661 = vmatpush1.bf16.msra.mxu1 %v2626_v27  ;;  %v2683_v26 = vld [vmem:[#allocation11 + $0x20] sm:$0xff]  }
 0x273   :  { %1619 = vmatprep.subr.bf16.mxu0 %v2631_v28  ;;  %1662 = vmatprep.subr.bf16.mxu1 %v2634_v29  ;;  %v2684_v27 = vld [vmem:[#allocation11 + $0xa0] sm:$0xff]   ;;  %v2685_v28 = vld [vmem:[#allocation11 + $0x68] sm:$0xff]  }
 0x274   :  { %v2686_v29 = vld [vmem:[#allocation11 + $0xe8] sm:$0xff]  }
 0x276   :  { %1620 = vmatpush1.bf16.msra.mxu0 %v2629_v30  ;;  %1663 = vmatpush1.bf16.msra.mxu1 %v2632_v31  ;;  %v2687_v30 = vld [vmem:[#allocation11 + $0x28] sm:$0xff]  }
 0x277   :  { %1621 = vmatprep.subr.bf16.mxu0 %v2637_v32  ;;  %1664 = vmatprep.subr.bf16.mxu1 %v2640_v33  ;;  %v2688_v31 = vld [vmem:[#allocation11 + $0xa8] sm:$0xff]   ;;  %v2689_v32 = vld [vmem:[#allocation11 + $0x70] sm:$0xff]  }
 0x278   :  { %v2690_v33 = vld [vmem:[#allocation11 + $0xf0] sm:$0xff]  }
 0x27a   :  { %1622 = vmatpush1.bf16.msra.mxu0 %v2635_v34  ;;  %1665 = vmatpush1.bf16.msra.mxu1 %v2638_v35  ;;  %v2691_v34 = vld [vmem:[#allocation11 + $0x30] sm:$0xff]  }
 0x27b   :  { %1623 = vmatprep.subr.bf16.mxu0 %v2643_v36  ;;  %1666 = vmatprep.subr.bf16.mxu1 %v2646_v37  ;;  %v2692_v35 = vld [vmem:[#allocation11 + $0xb0] sm:$0xff]   ;;  %v2693_v36 = vld [vmem:[#allocation11 + $0x78] sm:$0xff]  }
 0x27c   :  { %v2694_v37 = vld [vmem:[#allocation11 + $0xf8] sm:$0xff]  }
 0x27e   :  { %1624 = vmatpush1.bf16.msra.mxu0 %v2641_v38  ;;  %1667 = vmatpush1.bf16.msra.mxu1 %v2644_v46  ;;  %v2695_v38 = vld [vmem:[#allocation11 + $0x38] sm:$0xff]  }
 0x27f   :  { %1625 = vmatprep.subr.bf16.mxu0 %v2649_v39  ;;  %1668 = vmatprep.subr.bf16.mxu1 %v2652_v40  ;;  %v2696_v46 = vld [vmem:[#allocation11 + $0xb8] sm:$0xff]   ;;  %v1433_v39 = vld [vmem:[%s3080_s6] sm:$0xf] }
 0x280   :  { %v1438_v40 = vrot.slane %v1433_v39, %v786_v49 }
 0x282   :  { %1626 = vmatpush1.bf16.msra.mxu0 %v2647_v41  ;;  %1669 = vmatpush1.bf16.msra.mxu1 %v2650_v42  ;;  %v1446_v41 = vrot.slane %v1433_v39, %v794_v50  ;;  %v1442_v42 = vrot.slane %v1433_v39, %v790_v52 }
 0x283   :  { %1627 = vmatprep.subr.bf16.mxu0 %v2655_v43  ;;  %1670 = vmatprep.subr.bf16.mxu1 %v2658_v44  ;;  %v1450_v43 = vrot.slane %v1433_v39, %v798_v53 }
 0x286   :  { %1628 = vmatpush1.bf16.msra.mxu0 %v2653_v45  ;;  %1671 = vmatpush1.bf16.msra.mxu1 %v2656_v47 }
 0x287   :  { %1629 = vmatprep.subr.bf16.mxu0 %v2661_v51  ;;  %1672 = vmatprep.subr.bf16.mxu1 %v2664_v54 }
 0x28a   :  { %1630 = vmatpush1.bf16.msra.mxu0 %v2659_v55  ;;  %1673 = vmatpush1.bf16.msra.mxu1 %v2662_v56 }
 0x28b   :  { %2401 = vmatprep.subr.bf16.mxu0 %v2665_v57  ;;  %2423 = vmatprep.subr.bf16.mxu1 %v2666_v58 }
 0x340   :  { %v2373_v59 = vpop.f32.mrb[12].mxu0  ;;  %v2395_v60 = vpop.f32.mrb[12].mxu1 }
 0x341   :  { %v2374_v61 = vpop.f32.mrb[13].mxu0  ;;  %v2396_v62 = vpop.f32.mrb[13].mxu1 }
 0x342   :  { %v2375_v63 = vadd.f32 %v2374_v61, %v2373_v59  ;;  %v2397_v0 = vadd.f32 %v2396_v62, %v2395_v60  ;;  %v2376_v1 = vpop.f32.mrb[14].mxu0  ;;  %v2398_v2 = vpop.f32.mrb[14].mxu1 }
 0x343   :  { %v2377_v3 = vpop.f32.mrb[15].mxu0  ;;  %v2399_v4 = vpop.f32.mrb[15].mxu1 }
 0x344   :  { %v1394_v5 = vadd.f32 %v2397_v0, %v2375_v63  ;;  %v2378_v6 = vadd.f32 %v2377_v3, %v2376_v1  ;;  %v2400_v7 = vadd.f32 %v2399_v4, %v2398_v2 }
 0x346   :  { %v1397_v8 = vadd.f32 %v2400_v7, %v2378_v6 }
 0x348   :  { %v1400_v11 = vpack.c.bf16 %v1397_v8, %v1394_v5 }
 0x34a   :  { %1648 = vmatmul.mubr.bf16.vlgmr.msra.gmra.mrb[16].mxu0 %v1400_v11  ;;  %1691 = vmatmul.mubr.bf16.vlgmr.msra.gmra.mrb[16].mxu1 %v1400_v11  ;;  %v2240_v11 = vld [vmem:[%s3082_s8] ss:$0 sm:$0xff]  ;;  %s2829_s8 = scalar_lea.vmem %s2074_s4, 128 }
 0x34b   :  { %2402 = vmatpush3.bf16.msra.mxu0 %v2667_v9  ;;  %2424 = vmatpush3.bf16.msra.mxu1 %v2668_v10  ;;  %p2830_p6 = scmp.ne.s32.totalorder %s2074_s4, %s2829_s8  ;;  %p2835_p8 = scmp.lt.s32.totalorder %s2829_s8, %s2829_s8 }
 0x34c   :  { %2403 = vmatprep.subr.bf16.mxu0 %v2669_v12  ;;  %2425 = vmatprep.subr.bf16.mxu1 %v2670_v13 }
 0x34d   :  { %p2836_p9 = por %p2835_p8, %p2834_p7 }
 0x34f   :  { %2404 = vmatpush3.bf16.msra.mxu0 %v2671_v14  ;;  %2426 = vmatpush3.bf16.msra.mxu1 %v2672_v15  ;;  %p2837_p10 = pnand %p2836_p9, %p2830_p6 }
 0x350   :  { %2405 = vmatprep.subr.bf16.mxu0 %v2673_v16  ;;  %2427 = vmatprep.subr.bf16.mxu1 %v2674_v17 }
 0x353   :  { %2406 = vmatpush3.bf16.msra.mxu0 %v2675_v18  ;;  %2428 = vmatpush3.bf16.msra.mxu1 %v2676_v19 }
 0x354   :  { %2407 = vmatprep.subr.bf16.mxu0 %v2677_v20  ;;  %2429 = vmatprep.subr.bf16.mxu1 %v2678_v21 }
 0x357   :  { %2408 = vmatpush3.bf16.msra.mxu0 %v2679_v22  ;;  %2430 = vmatpush3.bf16.msra.mxu1 %v2680_v23 }
 0x358   :  { %2409 = vmatprep.subr.bf16.mxu0 %v2681_v24  ;;  %2431 = vmatprep.subr.bf16.mxu1 %v2682_v25 }
 0x35b   :  { %2410 = vmatpush3.bf16.msra.mxu0 %v2683_v26  ;;  %2432 = vmatpush3.bf16.msra.mxu1 %v2684_v27 }
 0x35c   :  { %2411 = vmatprep.subr.bf16.mxu0 %v2685_v28  ;;  %2433 = vmatprep.subr.bf16.mxu1 %v2686_v29 }
 0x35f   :  { %2412 = vmatpush3.bf16.msra.mxu0 %v2687_v30  ;;  %2434 = vmatpush3.bf16.msra.mxu1 %v2688_v31 }
 0x360   :  { %2413 = vmatprep.subr.bf16.mxu0 %v2689_v32  ;;  %2435 = vmatprep.subr.bf16.mxu1 %v2690_v33 }
 0x363   :  { %2414 = vmatpush3.bf16.msra.mxu0 %v2691_v34  ;;  %2436 = vmatpush3.bf16.msra.mxu1 %v2692_v35 }
 0x364   :  { %2415 = vmatprep.subr.bf16.mxu0 %v2693_v36  ;;  %2437 = vmatprep.subr.bf16.mxu1 %v2694_v37 }
 0x367   :  { %2416 = vmatpush3.bf16.msra.mxu0 %v2695_v38  ;;  %2438 = vmatpush3.bf16.msra.mxu1 %v2696_v46 }
 0x41d   :  { %v1649_v44 = vpop.f32.mrb[16].mxu0  ;;  %v1692_v45 = vpop.f32.mrb[16].mxu1 }
 0x41e   :  { %v1650_v47 = vadd.f32 %v1649_v44, %v1438_v40  ;;  %v1693_v51 = vadd.f32 %v1692_v45, %v1446_v41  ;;  %v1651_v54 = vpop.f32.mrb[17].mxu0  ;;  %v1694_v55 = vpop.f32.mrb[17].mxu1 }
 0x41f   :  { %v1652_v56 = vadd.f32 %v1651_v54, %v1442_v42  ;;  %v1695_v57 = vadd.f32 %v1694_v55, %v1450_v43  ;;  %v1653_v58 = vpop.f32.mrb[18].mxu0  ;;  %v1696_v59 = vpop.f32.mrb[18].mxu1 }
 0x420   :  { %v1654_v49 = vadd.f32 %v1653_v58, %v1438_v40  ;;  %v1697_v60 = vadd.f32 %v1696_v59, %v1446_v41  ;;  %v1655_v61 = vpop.f32.mrb[19].mxu0  ;;  %v1698_v50 = vpop.f32.mrb[19].mxu1  ;;  %v1701_v52 = vmax.f32 %v1650_v47, 0.0  ;;  %v1703_v0 = vmax.f32 %v1693_v51, 0.0 }
 0x421   :  { %v1656_v62 = vadd.f32 %v1655_v61, %v1442_v42  ;;  %v1699_v63 = vadd.f32 %v1698_v50, %v1450_v43  ;;  %v1702_v1 = vmax.f32 %v1652_v56, 0.0  ;;  %v1704_v2 = vmax.f32 %v1695_v57, 0.0 }
 0x422   :  { %v1705_v48 = vmax.f32 %v1654_v49, 0.0  ;;  %v1707_v53 = vmax.f32 %v1697_v60, 0.0 }
 0x423   :  { %v1706_v3 = vmax.f32 %v1656_v62, 0.0  ;;  %v1708_v4 = vmax.f32 %v1699_v63, 0.0 }
 0x424   :  { %v1709_v5 = vpack.c.bf16 %v1705_v48, %v1701_v52  ;;  %v1711_v6 = vpack.c.bf16 %v1707_v53, %v1703_v0 }
 0x425   :  { %v1710_v7 = vpack.c.bf16 %v1706_v3, %v1702_v1  ;;  %v1712_v8 = vpack.c.bf16 %v1708_v4, %v1704_v2 }
 0x427   :  { %2008 = vmatprep.mubr.bf16.mxu0 %v1710_v7  ;;  %2049 = vmatprep.mubr.bf16.mxu1 %v1712_v8 }
 0x428   :  { %2009 = vmatmul.mubr.bf16.vlgmr.msra.gmra.mrb[20].mxu0 %v1709_v5  ;;  %2050 = vmatmul.mubr.bf16.vlgmr.msra.gmra.mrb[20].mxu1 %v1711_v6 }
 0x4fb   :  { %v2417_v9 = vpop.f32.mrb[20].mxu0  ;;  %v2439_v10 = vpop.f32.mrb[20].mxu1 }
 0x4fc   :  { %v2418_v12 = vpop.f32.mrb[21].mxu0  ;;  %v2440_v13 = vpop.f32.mrb[21].mxu1 }
 0x4fd   :  { %v2419_v14 = vadd.f32 %v2418_v12, %v2417_v9  ;;  %v2441_v15 = vadd.f32 %v2440_v13, %v2439_v10  ;;  %v2420_v16 = vpop.f32.mrb[22].mxu0  ;;  %v2442_v17 = vpop.f32.mrb[22].mxu1 }
 0x4fe   :  { %v2421_v18 = vpop.f32.mrb[23].mxu0  ;;  %v2443_v19 = vpop.f32.mrb[23].mxu1 }
 0x4ff   :  { %v2011_v20 = vadd.f32 %v2419_v14, %v2240_v11  ;;  %v2422_v21 = vadd.f32 %v2421_v18, %v2420_v16  ;;  %v2444_v22 = vadd.f32 %v2443_v19, %v2442_v17 }
 0x501   :  { %v2052_v23 = vadd.f32 %v2441_v15, %v2011_v20  ;;  %v2014_v24 = vadd.f32 %v2422_v21, %v2240_v11 }
 0x503   :  { %v2055_v25 = vadd.f32 %v2444_v22, %v2014_v24 }
 0x505   :  { %v2280_v26 = vpack.c.bf16 %v2055_v25, %v2052_v23 }
 0x507   :  { %2281 = vst [vmem:[#allocation13] sm:$0xff] %v2280_v26  }
 0x508   :  { %2840 = shalt.err (!%p2837_p10)
}
 0x509   :  { %s2841_s28 = scalar_lea.hbm %s3083_s9, 128 }
 0x50a   :  { %p2842_p11 = scmp.ne.s32.totalorder %s3083_s9, %s2841_s28  ;;  %p2845_p12 = scmp.lt.u32.totalorder %s2841_s28, %s3083_s9 }
 0x50c   :  { %p2847_p13 = pnand %p2845_p12, %p2842_p11 }
 0x50e   :  { %2850 = shalt.err (!%p2847_p13)
}
 0x50f   :  { %2079 = dma.vmem_to_hbm [thread:$0]  %s2074_s4, 128, %s3083_s9, [#allocation4], %s2862_s19, %s2862_s19, %s2863_s20  }
 0x510   :  { %2859 = dma.done.wait [#allocation4], 128  }
 0x511   :  { %2860 = vsyncadd [#allocation4], 4294967168 }
 0x512   :  { %2083 = vsyncpa [#allocation3], 1 }
 0x513   :  { %2084 = vsyncpa [#allocation6], 1 }
 0x514   :  { %2085 = vsyncpa [#allocation9], 1 }
 0x515   :  { %2086 = vsyncpa [#allocation12], 1 }
 0x516   :  { %2087 = vsyncpa [#allocation4], 1 }

</bundles_post_ra>
